<compile_context>
chip_gen: v5e
topology: v5e:2x2
jax: 0.10.0
libtpu: 0.0.40
codegen_flags: <defaults>
</compile_context>

<pallas_src>
import functools

import jax
import jax.numpy as jnp
from jax.experimental import pallas as pl
from jax.experimental.pallas import tpu as pltpu


# ------------------------------- helpers ----------------------------------- #
def _round_up(x, m):
    return (x + m - 1) // m * m


def _divisor_tile(dim, preferred, align):
    """Largest multiple of `align` that is <= preferred and divides `dim`.

    `dim` must itself be a multiple of `align` (guaranteed by init-time padding),
    so this never forces a runtime re-pad of the weight/bias.
    """
    t = min(preferred, dim)
    t = max(align, (t // align) * align)
    while dim % t:
        t -= align
    return t


# ----------------------------- Pallas kernels ------------------------------ #
def _linear_resident_kernel(x_ref, wt_ref, b_ref, o_ref):
    # x_ref : (tm, Kp)  activations (f32/bf16); cast to bf16 in-kernel (VPU)
    # wt_ref: (Kp, tn)  bf16 weight panel. Its index_map is invariant in the
    #                   inner (M) grid axis, so it is DMA'd from HBM once per
    #                   N tile and stays resident in VMEM across all M tiles.
    # b_ref : (1, tn)   f32 bias
    # o_ref : (tm, tn)  output
    x = x_ref[...].astype(jnp.bfloat16)
    acc = jnp.dot(x, wt_ref[...], preferred_element_type=jnp.float32)
    o_ref[...] = (acc + b_ref[...]).astype(o_ref.dtype)


def _linear_ktiled_f32out_kernel(x_ref, wt_ref, b_ref, o_ref):
    # Fallback for very large K: K innermost; f32 o_ref doubles as the
    # accumulator (its block index is invariant across K -> stays in VMEM).
    k = pl.program_id(2)
    x = x_ref[...].astype(jnp.bfloat16)
    p = jnp.dot(x, wt_ref[...], preferred_element_type=jnp.float32)

    @pl.when(k == 0)
    def _():
        o_ref[...] = p + b_ref[...]      # bias folded into the first store

    @pl.when(k > 0)
    def _():
        o_ref[...] += p


def _linear_ktiled_scratch_kernel(x_ref, wt_ref, b_ref, o_ref, acc_ref):
    # Same as above but with an f32 scratch accumulator, for non-f32 outputs.
    k = pl.program_id(2)
    x = x_ref[...].astype(jnp.bfloat16)
    p = jnp.dot(x, wt_ref[...], preferred_element_type=jnp.float32)

    @pl.when(k == 0)
    def _():
        acc_ref[...] = p

    @pl.when(k > 0)
    def _():
        acc_ref[...] += p

    @pl.when(k == pl.num_programs(2) - 1)
    def _():
        o_ref[...] = (acc_ref[...] + b_ref[...]).astype(o_ref.dtype)


# ------------------------------- wrapper ------------------------------------ #
# Universal tile preset: multiples of 256 (fills v6e/v7x MXU rows, also a clean
# multiple of v5e's 128x128 MXU).  Double-buffered footprint is ~8-12 MiB, so
# it fits every generation's VMEM with room to spare.
_TM, _TN, _TK = 512, 512, 1024
_VMEM_LIMIT = 48 * 1024 * 1024        # > scoped defaults (16/32 MiB), < v7x 64 MiB
_RESIDENT_BUDGET = 32 * 1024 * 1024   # budget used to decide weight residency


@functools.partial(
    jax.jit,
    static_argnames=("n_out", "out_dtype", "tm", "tn", "tk", "force_k_tiled"),
)
def pallas_linear(x, w_t, b, *, n_out=None, out_dtype=jnp.float32,
                  tm=_TM, tn=_TN, tk=_TK, force_k_tiled=False):
    """y = x @ w_t + b (first n_out columns), MXU matmul with f32 accumulation.

    x   : (M, K)    activations (f32 or bf16); cast to bf16 inside the kernel
    w_t : (Kp, Np)  pre-transposed, pre-padded (multiples of 128) bf16 weight
    b   : (1, Np)   pre-padded f32 bias
    """
    M, K = x.shape
    Kp, Np = w_t.shape
    if n_out is None:
        n_out = Np
    assert Kp % 128 == 0 and Np % 128 == 0 and Kp >= K
    assert b.shape == (1, Np)

    # Lane/sublane-aligned tiles that divide the padded weight extents.
    tn = _divisor_tile(Np, tn, 128)
    tk = _divisor_tile(Kp, tk, 128)
    tm = min(tm, _round_up(M, 8))
    Mp = _round_up(M, tm)

    # Pad activations only when needed (zero-padding along K is benign).
    if Mp != M or Kp != K:
        x = jnp.pad(x, ((0, Mp - M), (0, Kp - K)))

    x_bytes = jnp.dtype(x.dtype).itemsize
    out_bytes = jnp.dtype(out_dtype).itemsize
    cost = pl.CostEstimate(
        flops=2 * M * n_out * K,
        transcendentals=0,
        bytes_accessed=(M * K * x_bytes + Kp * Np * 2 + Np * 4
                        + M * n_out * out_bytes),
    )

    # Weight-resident path: hold the full (Kp, tn) weight panel in VMEM with a
    # block index invariant in the inner (M) grid axis -> weight read from HBM
    # exactly once (dominant bandwidth term for LLM-shaped Linears).
    resident_bytes = (
        2 * tm * Kp * x_bytes      # double-buffered activation blocks
        + 2 * Kp * tn * 2          # weight panel buffers (bf16)
        + 2 * tm * tn * out_bytes  # output blocks
        + 2 * tn * 4               # bias
    )
    use_resident = (not force_k_tiled) and resident_bytes <= _RESIDENT_BUDGET

    if use_resident:
        grid = (Np // tn, Mp // tm)          # M innermost -> weight stays resident
        out = pl.pallas_call(
            _linear_resident_kernel,
            out_shape=jax.ShapeDtypeStruct((Mp, Np), out_dtype),
            grid_spec=pltpu.PrefetchScalarGridSpec(
                num_scalar_prefetch=0,
                grid=grid,
                in_specs=[
                    pl.BlockSpec((tm, Kp), lambda j, i: (i, 0)),
                    pl.BlockSpec((Kp, tn), lambda j, i: (0, j)),  # invariant in i
                    pl.BlockSpec((1, tn), lambda j, i: (0, j)),
                ],
                out_specs=pl.BlockSpec((tm, tn), lambda j, i: (i, j)),
            ),
            compiler_params=pltpu.CompilerParams(
                dimension_semantics=("parallel", "parallel"),
                vmem_limit_bytes=_VMEM_LIMIT,
            ),
            cost_estimate=cost,
        )(x, w_t, b)
    else:
        # K-tiled fallback for K panels too large to keep resident.
        # TODO(synk): if xprof shows exposed DMA on v7x, add
        # pipeline_mode=pl.Buffered(3) on the x / weight BlockSpecs.
        grid = (Mp // tm, Np // tn, Kp // tk)   # K innermost (reduction)
        in_specs = [
            pl.BlockSpec((tm, tk), lambda i, j, k: (i, k)),
            pl.BlockSpec((tk, tn), lambda i, j, k: (k, j)),
            pl.BlockSpec((1, tn), lambda i, j, k: (0, j)),
        ]
        out_spec = pl.BlockSpec((tm, tn), lambda i, j, k: (i, j))
        params = pltpu.CompilerParams(
            dimension_semantics=("parallel", "parallel", "arbitrary"),
            vmem_limit_bytes=_VMEM_LIMIT,
        )
        if out_dtype == jnp.float32:
            out = pl.pallas_call(
                _linear_ktiled_f32out_kernel,
                out_shape=jax.ShapeDtypeStruct((Mp, Np), jnp.float32),
                grid_spec=pltpu.PrefetchScalarGridSpec(
                    num_scalar_prefetch=0, grid=grid,
                    in_specs=in_specs, out_specs=out_spec,
                ),
                compiler_params=params,
                cost_estimate=cost,
            )(x, w_t, b)
        else:
            out = pl.pallas_call(
                _linear_ktiled_scratch_kernel,
                out_shape=jax.ShapeDtypeStruct((Mp, Np), out_dtype),
                grid_spec=pltpu.PrefetchScalarGridSpec(
                    num_scalar_prefetch=0, grid=grid,
                    in_specs=in_specs, out_specs=out_spec,
                    scratch_shapes=[pltpu.VMEM((tm, tn), jnp.float32)],
                ),
                compiler_params=params,
                cost_estimate=cost,
            )(x, w_t, b)

    if Mp != M or Np != n_out:
        out = out[:M, :n_out]
    return out


# --------------------------- Module equivalents ---------------------------- #
class LinearModule:
    """The wrapped 'nn.Module': a Linear whose hot path is the Pallas matmul.

    Weight is stored pre-transposed, pre-padded to 128-multiples and pre-cast
    to bf16 ONCE at construction, so the per-forward path does no host-side
    pad/cast HBM passes.  Bias stays f32 (added in the f32 epilogue).
    """

    def __init__(self, in_features, out_features, *, out_dtype=jnp.float32):
        self.in_features = in_features
        self.out_features = out_features
        self.out_dtype = out_dtype

        kw, kb = jax.random.split(jax.random.PRNGKey(42))
        scale = 1.0 / jnp.sqrt(jnp.asarray(in_features, jnp.float32))
        w_t = jax.random.normal(kw, (in_features, out_features), jnp.float32) * scale
        bias = jax.random.normal(kb, (1, out_features), jnp.float32) * scale

        kp = _round_up(in_features, 128)
        np_ = _round_up(out_features, 128)
        if (kp, np_) != (in_features, out_features):
            w_t = jnp.pad(w_t, ((0, kp - in_features), (0, np_ - out_features)))
            bias = jnp.pad(bias, ((0, 0), (0, np_ - out_features)))
        self.w_t = w_t.astype(jnp.bfloat16)   # MXU operand dtype, padded once
        self.b = bias                          # f32, padded once

    def __call__(self, x, *, force_k_tiled=False):
        return pallas_linear(
            x, self.w_t, self.b,
            n_out=self.out_features, out_dtype=self.out_dtype,
            force_k_tiled=force_k_tiled,
        )


class ModelWrapper:
    """JAX equivalent of colossalai ModelWrapper: forward delegates to module."""

    def __init__(self, module):
        self.module = module

    def unwrap(self, unwrap_peft: bool = True):
        # TODO(synk): PeftModel / PeftUnwrapMixin unwrap path is parameter-name
        # bookkeeping only (no tensor compute); plain delegation is reproduced.
        if isinstance(self.module, ModelWrapper):
            return self.module.unwrap(unwrap_peft)
        return self.module

    def __call__(self, *args, **kwargs):
        # exact forward semantics: pure delegation
        return self.module(*args, **kwargs)


# --------------------------------- main ------------------------------------ #
if __name__ == "__main__":
    # Modest shapes that still exercise tiling: resident path grid = (2, 1)
    # (Np=768 -> tn=384 via divisor search), k-tiled test grid = (2, 3, 4).
    B, DIN, DOUT = 256, 512, 768

    x = jax.random.normal(jax.random.PRNGKey(0), (B, DIN), jnp.float32)

    inner = LinearModule(DIN, DOUT)
    wrapped = ModelWrapper(inner)

    # forward == pure delegation to the wrapped module's Pallas hot path
    y = jax.block_until_ready(wrapped(x))

    # Reference with matching numerics: bf16-rounded operands, f32 accumulate.
    x_f = x.astype(jnp.bfloat16).astype(jnp.float32)
    w_f = inner.w_t[:DIN, :DOUT].astype(jnp.float32)
    y_ref = x_f @ w_f + inner.b[:, :DOUT]

    assert y.shape == (B, DOUT) and y.dtype == jnp.float32
    assert jnp.allclose(y, y_ref, atol=1e-2, rtol=1e-2), (
        float(jnp.max(jnp.abs(y - y_ref)))
    )

    # Also validate the K-tiled fallback (multi-step accumulation, f32 in-place).
    y_kt = pallas_linear(
        x, inner.w_t, inner.b, n_out=DOUT, out_dtype=jnp.float32,
        tm=128, tn=256, tk=128, force_k_tiled=True,
    )
    y_kt = jax.block_until_ready(y_kt)
    assert jnp.allclose(y_kt, y_ref, atol=1e-2, rtol=1e-2), (
        float(jnp.max(jnp.abs(y_kt - y_ref)))
    )

    # And the scratch-accumulator variant used for bf16 outputs.
    y_bf = pallas_linear(
        x, inner.w_t, inner.b, n_out=DOUT, out_dtype=jnp.bfloat16,
        tm=128, tn=256, tk=128, force_k_tiled=True,
    )
    y_bf = jax.block_until_ready(y_bf)
    assert y_bf.dtype == jnp.bfloat16
    assert jnp.allclose(y_bf.astype(jnp.float32), y_ref, atol=1e-1, rtol=5e-2), (
        float(jnp.max(jnp.abs(y_bf.astype(jnp.float32) - y_ref)))
    )

    # wrapper delegation check: unwrap() returns the original module
    assert wrapped.unwrap() is inner

    print("KERNEL_OK")
</pallas_src>

<mosaic_0001>
module attributes {stable_mosaic.version = 11 : i64} {
  func.func @_linear_resident_kernel(%arg0: i32, %arg1: i32, %arg2: memref<256x512xf32, #tpu.memory_space<vmem>>, %arg3: memref<512x384xbf16, #tpu.memory_space<vmem>>, %arg4: memref<1x384xf32, #tpu.memory_space<vmem>>, %arg5: memref<256x384xf32, #tpu.memory_space<vmem>>) attributes {dimension_semantics = [#tpu.dimension_semantics<parallel>, #tpu.dimension_semantics<parallel>], iteration_bounds = array<i64: 2, 1>, scalar_prefetch = 0 : i64, scratch_operands = 0 : i64, tpu.core_type = #tpu.core_type<tc>, window_params = [{transform_indices = @transform_0, window_bounds = array<i64: 256, 512>}, {transform_indices = @transform_1, window_bounds = array<i64: 512, 384>}, {transform_indices = @transform_2, window_bounds = array<i64: 1, 384>}, {transform_indices = @transform_3, window_bounds = array<i64: 256, 384>}]} {
    %c0 = arith.constant 0 : index
    %c0_0 = arith.constant 0 : index
    %0 = vector.load %arg2[%c0, %c0_0] : memref<256x512xf32, #tpu.memory_space<vmem>>, vector<256x512xf32>
    %1 = arith.truncf %0 : vector<256x512xf32> to vector<256x512xbf16>
    %c0_1 = arith.constant 0 : index
    %c0_2 = arith.constant 0 : index
    %2 = vector.load %arg3[%c0_1, %c0_2] : memref<512x384xbf16, #tpu.memory_space<vmem>>, vector<512x384xbf16>
    %cst = arith.constant dense<0.000000e+00> : vector<256x384xf32>
    %3 = tpu.matmul %1, %2, %cst {dimension_numbers = #tpu.dot_dimension_numbers<[1], [0], [0], [1], [0, 0, 1, 1], [], []>} : vector<256x512xbf16>, vector<512x384xbf16>, vector<256x384xf32> -> vector<256x384xf32>
    %c0_3 = arith.constant 0 : index
    %c0_4 = arith.constant 0 : index
    %4 = vector.load %arg4[%c0_3, %c0_4] : memref<1x384xf32, #tpu.memory_space<vmem>>, vector<1x384xf32>
    %5 = vector.broadcast %4 : vector<1x384xf32> to vector<256x384xf32>
    %6 = arith.addf %3, %5 : vector<256x384xf32>
    %c0_5 = arith.constant 0 : index
    %c0_6 = arith.constant 0 : index
    %7 = vector.load %arg5[%c0_5, %c0_6] : memref<256x384xf32, #tpu.memory_space<vmem>>, vector<256x384xf32>
    tpu.vector_store %arg5[%c0_5, %c0_6], %6 {strides = array<i32>} : memref<256x384xf32, #tpu.memory_space<vmem>>, vector<256x384xf32>,
    return
  }
  func.func @transform_0(%arg0: i32, %arg1: i32) -> (i32, i32) {
    %c0_i32 = arith.constant 0 : i32
    %c0_i32_0 = arith.constant 0 : i32
    return %arg1, %c0_i32 : i32, i32
  }
  func.func @transform_1(%arg0: i32, %arg1: i32) -> (i32, i32) {
    %c0_i32 = arith.constant 0 : i32
    %c0_i32_0 = arith.constant 0 : i32
    return %c0_i32, %arg0 : i32, i32
  }
  func.func @transform_2(%arg0: i32, %arg1: i32) -> (i32, i32) {
    %c0_i32 = arith.constant 0 : i32
    %c0_i32_0 = arith.constant 0 : i32
    return %c0_i32, %arg0 : i32, i32
  }
  func.func @transform_3(%arg0: i32, %arg1: i32) -> (i32, i32) {
    %c0_i32 = arith.constant 0 : i32
    return %arg1, %arg0 : i32, i32
  }
}

</mosaic_0001>

<bundles_post_ra>
// kernel: pallas_linear.1
= control target key start
LH: loop header
LB: loop body
LE: loop exit
PB: predicated region body
PF: predicated region fallthrough
CT: control target
= control target key end

     0   :  { %s4096_s0 = inlined_call_operand.hbm [shape: f32[256,512], index: 0, kind: input, shape index: {}]   ;;  %s4097_s1 = inlined_call_operand.hbm [shape: bf16[512,768], index: 1, kind: input, shape index: {}]   ;;  %s4098_s2 = inlined_call_operand.hbm [shape: f32[1,768], index: 2, kind: input, shape index: {}]   ;;  %s4099_s3 = inlined_call_operand.hbm [shape: f32[256,768], index: 3, kind: output, shape index: {}]  }
   0x1   :  { %4142 = sst [smem:[#allocation34_spill]] %s4096_s0 }
   0x2   :  { %4143 = sst [smem:[#allocation35_spill]] %s4097_s1 }
   0x3   :  { %8 = vsyncpa [#allocation3], 0 }
   0x4   :  { %9 = vsyncpa [#allocation6], 0 }
   0x5   :  { %11 = vsyncpa [#allocation6 + $0x1], 0 }
   0x6   :  { %12 = vsyncpa [#allocation4], 0 }
   0x7   :  { %14 = vsyncpa [#allocation4 + $0x1], 0  ;;  %s3204_s12 = smov 0   ;;  %s3206_s13 = smov 0  }
   0x8   :  { %s3208_s14 = smov 0   ;;  %s3210_s15 = smov 0  }
   0x9   :  { %s3212_s16 = smov 0   ;;  %s3214_s17 = smov 0  }
   0xa LB: > { %s32_s18 = sadd.s32 1, %s3169_s16  ;;  %s65_s19 = sadd.s32 1, %s3161_s14  ;;  %s3173_s17 = sphi %s3214_s17, %s20_s17   ;;  %s3169_s16 = sphi %s3212_s16, %s4215_s16   ;;  %s3165_s15 = sphi %s3210_s15, %s4214_s15   ;;  %s3161_s14 = sphi %s3208_s14, %s4213_s14   ;;  %s3157_s13 = sphi %s3206_s13, %s4212_s13   ;;  %s3153_s12 = sphi %s3204_s12, %s4211_s12  }
   0xb   : > { %p34_p0 = scmp.ge.s32.totalorder %s32_s18, 2  ;;  %p72_p1 = scmp.ne.s32.totalorder %s3161_s14, %s3157_s13 }
   0xc   : > { %p73_p2 = scmp.eq.s32.totalorder %s3173_s17, 0  ;;  %p2417_p3 = scmp.ge.s32.totalorder %s3173_s17, 2 }
   0xd   : > { %s4217_s18 = smov (%p34_p0, %s32_s18), 0  ;;  %p2936_p5 = scmp.lt.s32.totalorder %s3173_s17, 2 }
   0xe   : > { %p74_p4 = por %p73_p2, %p72_p1  ;;  %s62_s20 = ssub.s32 %s3169_s16, %s4217_s18 }
   0xf   : > { %s174_s21 = sand.u32 1, %s3173_s17   ;;  %p63_p6 = scmp.eq.s32.totalorder %s62_s20, 0 }
  0x10   : > { %s176_s22 = sand.u32 1, %s3161_s14   ;;  %s2808_s23 = smul.u32 12, %s3169_s16 }
  0x11   : > { %s3252_s24 = scalar_select %p63_p6, %s3161_s14, %s65_s19  }
  0x12   : > { %s2906_s25 = smul.u32 768, %s176_s22  ;;  %s4144_s1 = sld [smem:[#allocation35_spill]] }
  0x13   : > { %p3259_p7 = pnand %p2936_p5, %p74_p4  ;;  %s3263_s6 = scalar_lea.sflag [#allocation6], %s174_s21 }
  0x14   : > { %s178_s4 = scalar_lea.vmem [#allocation5], %s2906_s25  ;;  %s3175_s7 = smov 384  }
  0x15   : > { %s186_s5 = sshll.u32 %s178_s4, 4  ;;  %s3176_s8 = smov 192   ;;  %s187_s5 = int_to_ptr.vmem [resolvable:$true] %s186_s5 }
  0x16   : > { %s3177_s9 = smov 12   ;;  %s3269_s10 = sadd.s32 4294967295, %s3173_s17  }
  0x17   : > { %s2414_s11 = sadd.s32 4294967294, %s3173_s17   ;;  %p78_p8 = scmp.ne.s32.totalorder %s3157_s13, %s3153_s12 }
  0x18   : > { %s183_s28 = scalar_lea.hbm %s4144_s1, %s2808_s23  ;;  %p79_p9 = scmp.eq.s32.totalorder %s3269_s10, 0 }
  0x19   : > { %s184_s29 = sshll.u32 %s183_s28, 4  ;;  %p130_p10 = scmp.eq.s32.totalorder %s3269_s10, 1  ;;  %s185_s29 = int_to_ptr.hbm [resolvable:$true] %s184_s29 }
  0x1a   : > { %2927 = dma.hbm_to_vmem [thread:$0]  (!%p3259_p7), %s185_s29, 12288, %s187_s5, %s3263_s6, %s3175_s7, %s3176_s8, %s3177_s9  }
  0x1b   : > { %p136_p11 = scmp.eq.s32.totalorder %s2414_s11, 1  ;;  %p3278_p12 = por %p79_p9, %p78_p8 }
  0x1c   : > { %p2415_p13 = scmp.ge.s32.totalorder %s3173_s17, 1  ;;  %p3286_p0 = por %p130_p10, %p72_p1 }
  0x1d   : > { %p3290_p2 = por %p136_p11, %p78_p8  ;;  %p143_p4 = scmp.lt.s32.totalorder %s3173_s17, 3 }
  0x1e   : > { %s4149_s0 = sld [smem:[#allocation34_spill]]  ;;  %s3178_s28 = smov [#allocation2]  }
  0x1f   : > { %p3298_p5 = pnand %p2415_p13, %p143_p4  ;;  %s160_s29 = sshll.u32 %s3178_s28, 4  ;;  %s161_s29 = int_to_ptr.vmem [resolvable:$true] %s160_s29 }
  0x20   : > { %s2907_s4 = smul.u32 3, %s176_s22  ;;  %s3179_s11 = smov 512  }
  0x21   : > { %p2920_p1 = pneg %p3298_p5  ;;  %s201_s5 = smul.u32 3, %s3169_s16 }
  0x22   : > { %s3180_s23 = smov 32  }
  0x23   : > { %p2921_p6 = pnand %p2920_p1, %p79_p9  ;;  %s204_s9 = scalar_lea.hbm %s4098_s2, %s201_s5 }
  0x24   : > { %s158_s26 = sshll.u32 %s4149_s0, 4  ;;  %s206_s25 = sshll.u32 %s204_s9, 4  ;;  %s159_s26 = int_to_ptr.hbm [resolvable:$true] %s158_s26  ;;  %s207_s25 = int_to_ptr.hbm [resolvable:$true] %s206_s25 }
  0x25   : > { %2923 = dma.hbm_to_vmem [thread:$0]  (!%p2921_p6), %s159_s26, 16384, %s161_s29, [#allocation3], %s3179_s11, %s3179_s11, %s3180_s23  }
  0x26   : > { %s200_s0 = scalar_lea.vmem [#allocation7], %s2907_s4  ;;  %217 = sbr.rel (%p3298_p5) target bundleno = 986 (0x3da), region = 32 }
  0x27   : > { %s208_s1 = sshll.u32 %s200_s0, 4  ;;  %s209_s1 = int_to_ptr.vmem [resolvable:$true] %s208_s1 }
  0x28   : > { %2930 = dma.hbm_to_vmem [thread:$0]  (!%p3259_p7), %s207_s25, 48, %s209_s1, %s3263_s6  }
  0x2b   : > { %3140 = dma.done.wait (%p79_p9), [#allocation3], 16384  }
  0x2c   : > { %3142 = vsyncadd (%p79_p9), [#allocation3], 4294950912  ;;  %s224_s22 = sand.u32 1, %s3269_s10   ;;  %s3323_s26 = sand.u32 1, %s3157_s13  }
  0x2d   : > { %s2908_s0 = smul.u32 768, %s3323_s26  ;;  %s225_s30 = scalar_lea.sflag [#allocation6], %s224_s22 }
  0x2f   : > { %s3328_s1 = scalar_lea.vmem [#allocation5], %s2908_s0 }
  0x30   : > { %3144 = dma.done.wait (%p3278_p12), %s225_s30, 12336  }
  0x31   : > { %3146 = vsyncadd (%p3278_p12), %s225_s30, 4294954960  ;;  %v2507_v0 = vld [vmem:[%s3328_s1 + $0xa8] sm:$0xf]  ;;  %v2831_v1 = vld [vmem:[%s3328_s1 + $0xb0] sm:$0xf0]  ;;  %s2909_s6 = smul.u32 3, %s3323_s26 }
  0x32   : > { %v2603_v2 = vld [vmem:[%s3328_s1 + $0x168] sm:$0xf]  ;;  %v2508_v3 = vor.u32 %v2831_v1, %v2507_v0  ;;  %v2855_v4 = vld [vmem:[%s3328_s1 + $0x170] sm:$0xf0]  ;;  %v2495_v11 = vld [vmem:[%s3328_s1 + $0x90] sm:$0xf] }
  0x33   : > { %v2699_v5 = vld [vmem:[%s3328_s1 + $0x228] sm:$0xf]  ;;  %v2879_v6 = vld [vmem:[%s3328_s1 + $0x230] sm:$0xf0]  ;;  %v2604_v7 = vor.u32 %v2855_v4, %v2603_v2  ;;  %v2828_v13 = vld [vmem:[%s3328_s1 + $0x98] sm:$0xf0] }
  0x34   : > { %v2700_v8 = vor.u32 %v2879_v6, %v2699_v5  ;;  %v2795_v9 = vld [vmem:[%s3328_s1 + $0x2e8] sm:$0xf]  ;;  %v2903_v10 = vld [vmem:[%s3328_s1 + $0x2f0] sm:$0xf0]  ;;  %1112 = vmatpush.bf16.msra.mxu0 %v2508_v3  ;;  %v2591_v14 = vld [vmem:[%s3328_s1 + $0x150] sm:$0xf]  ;;  %v2496_v16 = vor.u32 %v2828_v13, %v2495_v11 }
  0x35   : > { %v2796_v12 = vor.u32 %v2903_v10, %v2795_v9  ;;  %v2852_v15 = vld [vmem:[%s3328_s1 + $0x158] sm:$0xf0]  ;;  %1201 = vmatpush.bf16.msra.mxu1 %v2604_v7  ;;  %v2687_v18 = vld [vmem:[%s3328_s1 + $0x210] sm:$0xf]  ;;  %v2483_v23 = vld [vmem:[%s3328_s1 + $0x78] sm:$0xf] }
  0x36   : > { %1290 = vmatpush.bf16.msra.mxu2 %v2700_v8  ;;  %v2592_v17 = vor.u32 %v2852_v15, %v2591_v14  ;;  %v2876_v19 = vld [vmem:[%s3328_s1 + $0x218] sm:$0xf0]  ;;  %v2783_v20 = vld [vmem:[%s3328_s1 + $0x2d0] sm:$0xf]  ;;  %v2825_v24 = vld [vmem:[%s3328_s1 + $0x80] sm:$0xf0] }
  0x37   : > { %1379 = vmatpush.bf16.msra.mxu3 %v2796_v12  ;;  %v2688_v21 = vor.u32 %v2876_v19, %v2687_v18  ;;  %v2900_v22 = vld [vmem:[%s3328_s1 + $0x2d8] sm:$0xf0]  ;;  %v2579_v26 = vld [vmem:[%s3328_s1 + $0x138] sm:$0xf]  ;;  %v2849_v27 = vld [vmem:[%s3328_s1 + $0x140] sm:$0xf0]  ;;  %v2484_v29 = vor.u32 %v2825_v24, %v2483_v23 }
  0x38   : > { %v2784_v25 = vor.u32 %v2900_v22, %v2783_v20  ;;  %v2675_v28 = vld [vmem:[%s3328_s1 + $0x1f8] sm:$0xf]  ;;  %1113 = vmatpush.bf16.msra.mxu0 %v2496_v16  ;;  %v2873_v30 = vld [vmem:[%s3328_s1 + $0x200] sm:$0xf0]  ;;  %v2580_v33 = vor.u32 %v2849_v27, %v2579_v26  ;;  %v2471_v35 = vld [vmem:[%s3328_s1 + $0x60] sm:$0xf] }
  0x39   : > { %v2771_v31 = vld [vmem:[%s3328_s1 + $0x2b8] sm:$0xf]  ;;  %v2897_v32 = vld [vmem:[%s3328_s1 + $0x2c0] sm:$0xf0]  ;;  %1202 = vmatpush.bf16.msra.mxu1 %v2592_v17  ;;  %v2676_v34 = vor.u32 %v2873_v30, %v2675_v28  ;;  %v2822_v36 = vld [vmem:[%s3328_s1 + $0x68] sm:$0xf0] }
  0x3a   : > { %1291 = vmatpush.bf16.msra.mxu2 %v2688_v21  ;;  %v2567_v37 = vld [vmem:[%s3328_s1 + $0x120] sm:$0xf]  ;;  %v2772_v38 = vor.u32 %v2897_v32, %v2771_v31  ;;  %v2846_v39 = vld [vmem:[%s3328_s1 + $0x128] sm:$0xf0]  ;;  %v2472_v44 = vor.u32 %v2822_v36, %v2471_v35  ;;  %v2459_v47 = vld [vmem:[%s3328_s1 + $0x48] sm:$0xf] }
  0x3b   : > { %1380 = vmatpush.bf16.msra.mxu3 %v2784_v25  ;;  %v2663_v40 = vld [vmem:[%s3328_s1 + $0x1e0] sm:$0xf]  ;;  %v2870_v41 = vld [vmem:[%s3328_s1 + $0x1e8] sm:$0xf0]  ;;  %v2568_v45 = vor.u32 %v2846_v39, %v2567_v37  ;;  %v2819_v48 = vld [vmem:[%s3328_s1 + $0x50] sm:$0xf0] }
  0x3c   : > { %v2759_v42 = vld [vmem:[%s3328_s1 + $0x2a0] sm:$0xf]  ;;  %v2894_v43 = vld [vmem:[%s3328_s1 + $0x2a8] sm:$0xf0]  ;;  %1114 = vmatpush.bf16.msra.mxu0 %v2484_v29  ;;  %v2664_v46 = vor.u32 %v2870_v41, %v2663_v40  ;;  %v2555_v49 = vld [vmem:[%s3328_s1 + $0x108] sm:$0xf]  ;;  %v2460_v56 = vor.u32 %v2819_v48, %v2459_v47 }
  0x3d   : > { %1203 = vmatpush.bf16.msra.mxu1 %v2580_v33  ;;  %v2760_v50 = vor.u32 %v2894_v43, %v2759_v42  ;;  %v2843_v51 = vld [vmem:[%s3328_s1 + $0x110] sm:$0xf0]  ;;  %v2651_v52 = vld [vmem:[%s3328_s1 + $0x1c8] sm:$0xf]  ;;  %v2447_v59 = vld [vmem:[%s3328_s1 + $0x30] sm:$0xf] }
  0x3e   : > { %1292 = vmatpush.bf16.msra.mxu2 %v2676_v34  ;;  %v2867_v53 = vld [vmem:[%s3328_s1 + $0x1d0] sm:$0xf0]  ;;  %v2747_v54 = vld [vmem:[%s3328_s1 + $0x288] sm:$0xf]  ;;  %v2556_v57 = vor.u32 %v2843_v51, %v2555_v49  ;;  %v2816_v60 = vld [vmem:[%s3328_s1 + $0x38] sm:$0xf0] }
  0x3f   : > { %1381 = vmatpush.bf16.msra.mxu3 %v2772_v38  ;;  %v2891_v55 = vld [vmem:[%s3328_s1 + $0x290] sm:$0xf0]  ;;  %v2652_v58 = vor.u32 %v2867_v53, %v2651_v52  ;;  %v2543_v61 = vld [vmem:[%s3328_s1 + $0xf0] sm:$0xf]  ;;  %v2840_v63 = vld [vmem:[%s3328_s1 + $0xf8] sm:$0xf0]  ;;  %v2448_v4 = vor.u32 %v2816_v60, %v2447_v59 }
  0x40   : > { %1115 = vmatpush.bf16.msra.mxu0 %v2472_v44  ;;  %v2748_v62 = vor.u32 %v2891_v55, %v2747_v54  ;;  %v2639_v0 = vld [vmem:[%s3328_s1 + $0x1b0] sm:$0xf]  ;;  %v2864_v1 = vld [vmem:[%s3328_s1 + $0x1b8] sm:$0xf0]  ;;  %v2544_v5 = vor.u32 %v2840_v63, %v2543_v61  ;;  %v2435_v7 = vld [vmem:[%s3328_s1 + $0x18] sm:$0xf] }
  0x41   : > { %1204 = vmatpush.bf16.msra.mxu1 %v2568_v45  ;;  %v2735_v2 = vld [vmem:[%s3328_s1 + $0x270] sm:$0xf]  ;;  %v2888_v3 = vld [vmem:[%s3328_s1 + $0x278] sm:$0xf0]  ;;  %v2640_v6 = vor.u32 %v2864_v1, %v2639_v0  ;;  %v2813_v8 = vld [vmem:[%s3328_s1 + $0x20] sm:$0xf0] }
  0x42   : > { %1293 = vmatpush.bf16.msra.mxu2 %v2664_v46  ;;  %v2531_v9 = vld [vmem:[%s3328_s1 + $0xd8] sm:$0xf]  ;;  %v2736_v10 = vor.u32 %v2888_v3, %v2735_v2  ;;  %v2837_v11 = vld [vmem:[%s3328_s1 + $0xe0] sm:$0xf0]  ;;  %v2423_v16 = vld [vmem:[%s3328_s1] sm:$0xf]  ;;  %v2436_v17 = vor.u32 %v2813_v8, %v2435_v7 }
  0x43   : > { %1382 = vmatpush.bf16.msra.mxu3 %v2760_v50  ;;  %v2627_v12 = vld [vmem:[%s3328_s1 + $0x198] sm:$0xf]  ;;  %v2861_v13 = vld [vmem:[%s3328_s1 + $0x1a0] sm:$0xf0]  ;;  %v2810_v18 = vld [vmem:[%s3328_s1 + $0x8] sm:$0xf0]  ;;  %v2532_v21 = vor.u32 %v2837_v11, %v2531_v9 }
  0x44   : > { %1116 = vmatpush.bf16.msra.mxu0 %v2460_v56  ;;  %v2723_v14 = vld [vmem:[%s3328_s1 + $0x258] sm:$0xf]  ;;  %v2885_v15 = vld [vmem:[%s3328_s1 + $0x260] sm:$0xf0]  ;;  %v2519_v19 = vld [vmem:[%s3328_s1 + $0xc0] sm:$0xf]  ;;  %v2628_v22 = vor.u32 %v2861_v13, %v2627_v12  ;;  %v2424_v33 = vor.u32 %v2810_v18, %v2423_v16 }
  0x45   : > { %1205 = vmatpush.bf16.msra.mxu1 %v2556_v57  ;;  %v2834_v20 = vld [vmem:[%s3328_s1 + $0xc8] sm:$0xf0]  ;;  %v2615_v23 = vld [vmem:[%s3328_s1 + $0x180] sm:$0xf]  ;;  %v2724_v26 = vor.u32 %v2885_v15, %v2723_v14  ;;  %v2701_v32 = vld [vmem:[%s3328_s1 + $0x234] sm:$0xf0] }
  0x46   : > { %1294 = vmatpush.bf16.msra.mxu2 %v2652_v58  ;;  %v2858_v24 = vld [vmem:[%s3328_s1 + $0x188] sm:$0xf0]  ;;  %v2711_v25 = vld [vmem:[%s3328_s1 + $0x240] sm:$0xf]  ;;  %v2797_v36 = vld [vmem:[%s3328_s1 + $0x2f4] sm:$0xf0]  ;;  %v2520_v37 = vor.u32 %v2834_v20, %v2519_v19 }
  0x47   : > { %1383 = vmatpush.bf16.msra.mxu3 %v2748_v62  ;;  %v2882_v27 = vld [vmem:[%s3328_s1 + $0x248] sm:$0xf0]  ;;  %v272_v28 = vld [vmem:[#allocation2] sm:$0xff]  ;;  %v2616_v38 = vor.u32 %v2858_v24, %v2615_v23  ;;  %v274_v39 = vld [vmem:[#allocation2 + $0x10] sm:$0xff]  ;;  %s3535_s10 = scalar_lea.vmem [#allocation7], %s2909_s6  ;;  %s3562_s19 = scalar_lea.vmem [#allocation8], %s2908_s0 }
  0x48   : > { %1117 = vmatpush.bf16.msra.mxu0 %v2448_v4  ;;  %v276_v29 = vld [vmem:[#allocation2 + $0x20] sm:$0xff]  ;;  %v273_v30 = vld [vmem:[#allocation2 + $0x8] sm:$0xff]  ;;  %v278_v40 = vld [vmem:[#allocation2 + $0x30] sm:$0xff]  ;;  %v2712_v42 = vor.u32 %v2882_v27, %v2711_v25  ;;  %s2905_s27 = smul.u32 24, %s3165_s15  ;;  %s2292_s5 = sshll.u32 %s3562_s19, 4  ;;  %s2293_s5 = int_to_ptr.vmem [resolvable:$true] %s2292_s5 }
  0x49   : > { %1206 = vmatpush.bf16.msra.mxu1 %v2544_v5  ;;  %v2878_v31 = vld [vmem:[%s3328_s1 + $0x22c] sm:$0xf]  ;;  %v275_v41 = vld [vmem:[#allocation2 + $0x18] sm:$0xff]  ;;  %v3404_v47 = vpack.c.bf16 %v276_v29, %v272_v28  ;;  %v3410_v52 = vpack.c.bf16 %v278_v40, %v274_v39  ;;  %v2875_v56 = vld [vmem:[%s3328_s1 + $0x214] sm:$0xf]  ;;  %s2277_s15 = scalar_lea.sflag [#allocation4], %s3323_s26 }
  0x4a   : > { %1295 = vmatpush.bf16.msra.mxu2 %v2640_v6  ;;  %v277_v34 = vld [vmem:[#allocation2 + $0x28] sm:$0xff]  ;;  %v279_v43 = vld [vmem:[#allocation2 + $0x38] sm:$0xff]  ;;  %v2704_v44 = vor.u32 %v2878_v31, %v2701_v32  ;;  %v2689_v57 = vld [vmem:[%s3328_s1 + $0x21c] sm:$0xf0]  ;;  %s2291_s4 = scalar_lea.hbm %s4099_s3, %s2905_s27  ;;  %s3107_s25 = scalar_lea.hbm %s4099_s3, 1536 }
  0x4b   : > { %1384 = vmatpush.bf16.msra.mxu3 %v2736_v10  ;;  %v2902_v35 = vld [vmem:[%s3328_s1 + $0x2ec] sm:$0xf]  ;;  %v2509_v46 = vld [vmem:[%s3328_s1 + $0xb4] sm:$0xf0]  ;;  %v3408_v51 = vpack.c.bf16 %v277_v34, %v273_v30  ;;  %v3412_v53 = vpack.c.bf16 %v279_v43, %v275_v41  ;;  %v2827_v58 = vld [vmem:[%s3328_s1 + $0x94] sm:$0xf]  ;;  %v2692_v59 = vor.u32 %v2875_v56, %v2689_v57 }
  0x4c   : > { %1118 = vmatpush.bf16.msra.mxu0 %v2436_v17  ;;  %v2830_v45 = vld [vmem:[%s3328_s1 + $0xac] sm:$0xf]  ;;  %v2800_v48 = vor.u32 %v2902_v35, %v2797_v36  ;;  %v2605_v50 = vld [vmem:[%s3328_s1 + $0x174] sm:$0xf0]  ;;  %v2497_v60 = vld [vmem:[%s3328_s1 + $0x9c] sm:$0xf0] }
  0x4d   : > { %1207 = vmatpush.bf16.msra.mxu1 %v2532_v21  ;;  %v2854_v49 = vld [vmem:[%s3328_s1 + $0x16c] sm:$0xf]  ;;  %4151 = vst [vmem:[#allocation12_spill] sm:$0xff] %v3412_v53  ;;  %v2512_v54 = vor.u32 %v2830_v45, %v2509_v46  ;;  %v2899_v61 = vld [vmem:[%s3328_s1 + $0x2d4] sm:$0xf]  ;;  %v2500_v63 = vor.u32 %v2827_v58, %v2497_v60  ;;  %v280_v4 = vld [vmem:[#allocation2 + $0x40] sm:$0xff] }
  0x4e   : > { %1296 = vmatpush.bf16.msra.mxu2 %v2628_v22  ;;  %v2608_v55 = vor.u32 %v2854_v49, %v2605_v50  ;;  %v2785_v62 = vld [vmem:[%s3328_s1 + $0x2dc] sm:$0xf0]  ;;  %v2851_v1 = vld [vmem:[%s3328_s1 + $0x154] sm:$0xf]  ;;  %v281_v6 = vld [vmem:[#allocation2 + $0x48] sm:$0xff]  ;;  %s2294_s7 = sshll.u32 %s2291_s4, 4  ;;  %s2295_s7 = int_to_ptr.hbm [resolvable:$true] %s2294_s7 }
  0x4f   : > { %1385 = vmatpush.bf16.msra.mxu3 %v2724_v26  ;;  %v2788_v0 = vor.u32 %v2899_v61, %v2785_v62  ;;  %v2593_v2 = vld [vmem:[%s3328_s1 + $0x15c] sm:$0xf0]  ;;  %v285_v7 = vld [vmem:[#allocation2 + $0x68] sm:$0xff]  ;;  %v282_v8 = vld [vmem:[#allocation2 + $0x50] sm:$0xff]  ;;  %s3101_s8 = sshra.s32 %s2295_s7, 4  ;;  %s3102_s8 = int_to_ptr.hbm [resolvable:$true] %s3101_s8 }
  0x50   : > { %1119 = vmatpush.bf16.msra.mxu0 %v2424_v33  ;;  %v2596_v3 = vor.u32 %v2851_v1, %v2593_v2  ;;  %v284_v5 = vld [vmem:[#allocation2 + $0x60] sm:$0xff]  ;;  %v286_v9 = vld [vmem:[#allocation2 + $0x70] sm:$0xff]  ;;  %v283_v10 = vld [vmem:[#allocation2 + $0x58] sm:$0xff]  ;;  %v3428_v13 = vpack.c.bf16 %v285_v7, %v281_v6  ;;  %s3103_s9 = scalar_lea.hbm %s3102_s8, 768  ;;  %p3108_p10 = scmp.lt.s32.totalorder %s3102_s8, %s4099_s3 }
  0x51   : > { %1208 = vmatpush.bf16.msra.mxu1 %v2520_v37  ;;  %v287_v11 = vld [vmem:[#allocation2 + $0x78] sm:$0xff]  ;;  %v3426_v12 = vpack.c.bf16 %v284_v5, %v280_v4  ;;  %v3430_v14 = vpack.c.bf16 %v286_v9, %v282_v8  ;;  %v288_v16 = vld [vmem:[#allocation2 + $0x80] sm:$0xff]  ;;  %v289_v18 = vld [vmem:[#allocation2 + $0x88] sm:$0xff]  ;;  %p3104_p7 = scmp.ne.s32.totalorder %s3102_s8, %s3103_s9  ;;  %p3109_p11 = scmp.lt.s32.totalorder %s3107_s25, %s3103_s9 }
  0x52   : > { %1297 = vmatpush.bf16.msra.mxu2 %v2616_v38  ;;  %v3432_v15 = vpack.c.bf16 %v287_v11, %v283_v10  ;;  %v292_v17 = vld [vmem:[#allocation2 + $0xa0] sm:$0xff]  ;;  %v293_v19 = vld [vmem:[#allocation2 + $0xa8] sm:$0xff]  ;;  %v290_v20 = vld [vmem:[#allocation2 + $0x90] sm:$0xff] }
  0x53   : > { %1386 = vmatpush.bf16.msra.mxu3 %v2712_v42  ;;  %1120 = vmatmul.bf16.vlgmr.msra.gmra.mxu0 %v3404_v47  ;;  %v294_v21 = vld [vmem:[#allocation2 + $0xb0] sm:$0xff]  ;;  %v291_v22 = vld [vmem:[#allocation2 + $0x98] sm:$0xff]  ;;  %v3438_v24 = vpack.c.bf16 %v292_v17, %v288_v16  ;;  %v3440_v25 = vpack.c.bf16 %v293_v19, %v289_v18  ;;  %v2677_v29 = vld [vmem:[%s3328_s1 + $0x204] sm:$0xf0]  ;;  %p3105_p8 = pnand %p3104_p7, %p3286_p0  ;;  %p3110_p12 = por %p3109_p11, %p3108_p10 }
  0x54   : > { %1209 = vmatmul.bf16.vlgmr.msra.gmra.mxu1 %v3408_v51  ;;  %1468 = vmatpush.bf16.msrb.mxu0 %v2512_v54  ;;  %v295_v23 = vld [vmem:[#allocation2 + $0xb8] sm:$0xff]  ;;  %v3442_v26 = vpack.c.bf16 %v294_v21, %v290_v20  ;;  %v2485_v32 = vld [vmem:[%s3328_s1 + $0x84] sm:$0xf0]  ;;  %v296_v40 = vld [vmem:[#allocation2 + $0xc0] sm:$0xff] }
  0x55   : > { %1298 = vmatmul.bf16.vlgmr.msra.gmra.mxu2 %v3410_v52  ;;  %1557 = vmatpush.bf16.msrb.mxu1 %v2608_v55  ;;  %v3444_v27 = vpack.c.bf16 %v295_v23, %v291_v22  ;;  %v2872_v28 = vld [vmem:[%s3328_s1 + $0x1fc] sm:$0xf]  ;;  %v2773_v34 = vld [vmem:[%s3328_s1 + $0x2c4] sm:$0xf0]  ;;  %v300_v41 = vld [vmem:[#allocation2 + $0xe0] sm:$0xff]  ;;  %p3106_p9 = pneg %p3105_p8 }
  0x56   : > { %1646 = vmatpush.bf16.msrb.mxu2 %v2704_v44  ;;  %1387 = vmatmul.bf16.vlgmr.msra.gmra.mxu3 %v3412_v53  ;;  %v2824_v30 = vld [vmem:[%s3328_s1 + $0x7c] sm:$0xf]  ;;  %v2680_v31 = vor.u32 %v2872_v28, %v2677_v29  ;;  %v2581_v38 = vld [vmem:[%s3328_s1 + $0x144] sm:$0xf0]  ;;  %v298_v44 = vld [vmem:[#allocation2 + $0xd0] sm:$0xff]  ;;  %v3458_v49 = vpack.c.bf16 %v300_v41, %v296_v40 }
  0x57   : > { %1735 = vmatpush.bf16.msrb.mxu3 %v2800_v48  ;;  %v2896_v33 = vld [vmem:[%s3328_s1 + $0x2bc] sm:$0xf]  ;;  %v2488_v35 = vor.u32 %v2824_v30, %v2485_v32  ;;  %v297_v42 = vld [vmem:[#allocation2 + $0xc8] sm:$0xff]  ;;  %v302_v45 = vld [vmem:[#allocation2 + $0xf0] sm:$0xff]  ;;  %p3111_p13 = pnand %p3110_p12, %p3106_p9 }
  0x58   : > { %1469 = vmatpush.bf16.msrb.mxu0 %v2500_v63  ;;  %v2776_v36 = vor.u32 %v2896_v33, %v2773_v34  ;;  %v2848_v37 = vld [vmem:[%s3328_s1 + $0x13c] sm:$0xf]  ;;  %v301_v43 = vld [vmem:[#allocation2 + $0xe8] sm:$0xff]  ;;  %v3462_v54 = vpack.c.bf16 %v302_v45, %v298_v44  ;;  %v304_v56 = vld [vmem:[#allocation2 + $0x100] sm:$0xff] }
  0x59   : > { %1558 = vmatpush.bf16.msrb.mxu1 %v2596_v3  ;;  %v2584_v39 = vor.u32 %v2848_v37, %v2581_v38  ;;  %v299_v46 = vld [vmem:[#allocation2 + $0xd8] sm:$0xff]  ;;  %v3460_v50 = vpack.c.bf16 %v301_v43, %v297_v42  ;;  %v308_v57 = vld [vmem:[#allocation2 + $0x120] sm:$0xff]  ;;  %v305_v58 = vld [vmem:[#allocation2 + $0x108] sm:$0xff] }
  0x5a   : > { %1647 = vmatpush.bf16.msrb.mxu2 %v2692_v59  ;;  %v303_v48 = vld [vmem:[#allocation2 + $0xf8] sm:$0xff]  ;;  %v309_v59 = vld [vmem:[#allocation2 + $0x128] sm:$0xff]  ;;  %v306_v60 = vld [vmem:[#allocation2 + $0x110] sm:$0xff] }
  0x5b   : > { %1736 = vmatpush.bf16.msrb.mxu3 %v2788_v0  ;;  %v3464_v55 = vpack.c.bf16 %v303_v48, %v299_v46  ;;  %v310_v61 = vld [vmem:[#allocation2 + $0x130] sm:$0xff]  ;;  %v307_v62 = vld [vmem:[#allocation2 + $0x118] sm:$0xff]  ;;  %v3470_v0 = vpack.c.bf16 %v308_v57, %v304_v56  ;;  %v3472_v1 = vpack.c.bf16 %v309_v59, %v305_v58  ;;  %v2869_v4 = vld [vmem:[%s3328_s1 + $0x1e4] sm:$0xf] }
  0x5c   : > { %1470 = vmatpush.bf16.msrb.mxu0 %v2488_v35  ;;  %v311_v63 = vld [vmem:[#allocation2 + $0x138] sm:$0xff]  ;;  %v3474_v2 = vpack.c.bf16 %v310_v61, %v306_v60  ;;  %v2665_v5 = vld [vmem:[%s3328_s1 + $0x1ec] sm:$0xf0]  ;;  %v2821_v6 = vld [vmem:[%s3328_s1 + $0x64] sm:$0xf] }
  0x5d   : > { %1559 = vmatpush.bf16.msrb.mxu1 %v2584_v39  ;;  %v3476_v3 = vpack.c.bf16 %v311_v63, %v307_v62  ;;  %v2668_v7 = vor.u32 %v2869_v4, %v2665_v5  ;;  %v2473_v8 = vld [vmem:[%s3328_s1 + $0x6c] sm:$0xf0]  ;;  %v2893_v9 = vld [vmem:[%s3328_s1 + $0x2a4] sm:$0xf]  ;;  %v313_v22 = vld [vmem:[#allocation2 + $0x148] sm:$0xff] }
  0x5e   : > { %1648 = vmatpush.bf16.msrb.mxu2 %v2680_v31  ;;  %v2761_v10 = vld [vmem:[%s3328_s1 + $0x2ac] sm:$0xf0]  ;;  %v2476_v11 = vor.u32 %v2821_v6, %v2473_v8  ;;  %v2845_v17 = vld [vmem:[%s3328_s1 + $0x124] sm:$0xf]  ;;  %v317_v23 = vld [vmem:[#allocation2 + $0x168] sm:$0xff] }
  0x5f   : > { %1737 = vmatpush.bf16.msrb.mxu3 %v2776_v36  ;;  %v2764_v16 = vor.u32 %v2893_v9, %v2761_v10  ;;  %v2569_v18 = vld [vmem:[%s3328_s1 + $0x12c] sm:$0xf0]  ;;  %v312_v20 = vld [vmem:[#allocation2 + $0x140] sm:$0xff]  ;;  %v315_v30 = vld [vmem:[#allocation2 + $0x158] sm:$0xff]  ;;  %v3492_v33 = vpack.c.bf16 %v317_v23, %v313_v22 }
  0x60   : > { %v2572_v19 = vor.u32 %v2845_v17, %v2569_v18  ;;  %1471 = vmatpush.bf16.msrb.mxu0 %v2476_v11  ;;  %v316_v21 = vld [vmem:[#allocation2 + $0x160] sm:$0xff]  ;;  %v314_v28 = vld [vmem:[#allocation2 + $0x150] sm:$0xff]  ;;  %v319_v31 = vld [vmem:[#allocation2 + $0x178] sm:$0xff] }
  0x61   : > { %v318_v29 = vld [vmem:[#allocation2 + $0x170] sm:$0xff]  ;;  %v3490_v32 = vpack.c.bf16 %v316_v21, %v312_v20  ;;  %v3496_v35 = vpack.c.bf16 %v319_v31, %v315_v30  ;;  %v320_v36 = vld [vmem:[#allocation2 + $0x180] sm:$0xff]  ;;  %v321_v38 = vld [vmem:[#allocation2 + $0x188] sm:$0xff] }
  0x62   : > { %1649 = vmatpush.bf16.msrb.mxu2 %v2668_v7  ;;  %1560 = vmatpush.bf16.msrb.mxu1 %v2572_v19  ;;  %v3494_v34 = vpack.c.bf16 %v318_v29, %v314_v28  ;;  %v324_v37 = vld [vmem:[#allocation2 + $0x1a0] sm:$0xff]  ;;  %v325_v39 = vld [vmem:[#allocation2 + $0x1a8] sm:$0xff]  ;;  %v322_v40 = vld [vmem:[#allocation2 + $0x190] sm:$0xff] }
  0x63   : > { %1125 = vmatmul.bf16.gmra.mxu0 %v3426_v12  ;;  %1738 = vmatpush.bf16.msrb.mxu3 %v2764_v16  ;;  %v326_v41 = vld [vmem:[#allocation2 + $0x1b0] sm:$0xff]  ;;  %v323_v42 = vld [vmem:[#allocation2 + $0x198] sm:$0xff]  ;;  %v3502_v44 = vpack.c.bf16 %v324_v37, %v320_v36  ;;  %v3504_v45 = vpack.c.bf16 %v325_v39, %v321_v38  ;;  %v2866_v56 = vld [vmem:[%s3328_s1 + $0x1cc] sm:$0xf] }
  0x64   : > { %1214 = vmatmul.bf16.gmra.mxu1 %v3428_v13  ;;  %v327_v43 = vld [vmem:[#allocation2 + $0x1b8] sm:$0xff]  ;;  %v3506_v46 = vpack.c.bf16 %v326_v41, %v322_v40  ;;  %v2818_v58 = vld [vmem:[%s3328_s1 + $0x4c] sm:$0xf]  ;;  %v328_v5 = vld [vmem:[#allocation2 + $0x1c0] sm:$0xff] }
  0x65   : > { %1303 = vmatmul.bf16.gmra.mxu2 %v3430_v14  ;;  %v3508_v48 = vpack.c.bf16 %v327_v43, %v323_v42  ;;  %v2653_v57 = vld [vmem:[%s3328_s1 + $0x1d4] sm:$0xf0]  ;;  %v2890_v61 = vld [vmem:[%s3328_s1 + $0x28c] sm:$0xf]  ;;  %v332_v6 = vld [vmem:[#allocation2 + $0x1e0] sm:$0xff] }
  0x66   : > { %1392 = vmatmul.bf16.gmra.mxu3 %v3432_v15  ;;  %v2656_v59 = vor.u32 %v2866_v56, %v2653_v57  ;;  %v2461_v60 = vld [vmem:[%s3328_s1 + $0x54] sm:$0xf0]  ;;  %v329_v7 = vld [vmem:[#allocation2 + $0x1c8] sm:$0xff]  ;;  %v330_v11 = vld [vmem:[#allocation2 + $0x1d0] sm:$0xff]  ;;  %v3522_v20 = vpack.c.bf16 %v332_v6, %v328_v5 }
  0x67   : > { %v2749_v62 = vld [vmem:[%s3328_s1 + $0x294] sm:$0xf0]  ;;  %v2464_v63 = vor.u32 %v2818_v58, %v2461_v60  ;;  %v2842_v8 = vld [vmem:[%s3328_s1 + $0x10c] sm:$0xf]  ;;  %v334_v16 = vld [vmem:[#allocation2 + $0x1f0] sm:$0xff] }
  0x68   : > { %v2752_v4 = vor.u32 %v2890_v61, %v2749_v62  ;;  %1650 = vmatpush.bf16.msrb.mxu2 %v2656_v59  ;;  %v2557_v9 = vld [vmem:[%s3328_s1 + $0x114] sm:$0xf0]  ;;  %v333_v10 = vld [vmem:[#allocation2 + $0x1e8] sm:$0xff]  ;;  %v3526_v22 = vpack.c.bf16 %v334_v16, %v330_v11  ;;  %v592_v28 = vld [vmem:[%s3535_s10] sm:$0x7] }
  0x69   : > { %1472 = vmatpush.bf16.msrb.mxu0 %v2464_v63  ;;  %v2560_v17 = vor.u32 %v2842_v8, %v2557_v9  ;;  %v331_v18 = vld [vmem:[#allocation2 + $0x1d8] sm:$0xff]  ;;  %v3524_v21 = vpack.c.bf16 %v333_v10, %v329_v7  ;;  %v336_v29 = vld [vmem:[#allocation2 + $0x200] sm:$0xff]  ;;  %v337_v31 = vld [vmem:[#allocation2 + $0x208] sm:$0xff]  ;;  %v3538_v36 = vperm.slane %v592_v28, 0 }
  0x6a   : > { %1739 = vmatpush.bf16.msrb.mxu3 %v2752_v4  ;;  %v335_v19 = vld [vmem:[#allocation2 + $0x1f8] sm:$0xff]  ;;  %v340_v30 = vld [vmem:[#allocation2 + $0x220] sm:$0xff]  ;;  %v341_v37 = vld [vmem:[#allocation2 + $0x228] sm:$0xff] }
  0x6b   : > { %1561 = vmatpush.bf16.msrb.mxu1 %v2560_v17  ;;  %v3528_v23 = vpack.c.bf16 %v335_v19, %v331_v18  ;;  %v338_v38 = vld [vmem:[#allocation2 + $0x210] sm:$0xff]  ;;  %v339_v40 = vld [vmem:[#allocation2 + $0x218] sm:$0xff]  ;;  %v3540_v42 = vpack.c.bf16 %v340_v30, %v336_v29  ;;  %v3542_v56 = vpack.c.bf16 %v341_v37, %v337_v31  ;;  %v2641_v63 = vld [vmem:[%s3328_s1 + $0x1bc] sm:$0xf0] }
  0x6c   : > { %v342_v39 = vld [vmem:[#allocation2 + $0x230] sm:$0xff]  ;;  %v343_v41 = vld [vmem:[#allocation2 + $0x238] sm:$0xff]  ;;  %v2449_v6 = vld [vmem:[%s3328_s1 + $0x3c] sm:$0xf0] }
  0x6d   : > { %v3544_v57 = vpack.c.bf16 %v342_v39, %v338_v38  ;;  %v3547_v60 = vpack.c.bf16 %v343_v41, %v339_v40  ;;  %v2863_v62 = vld [vmem:[%s3328_s1 + $0x1b4] sm:$0xf]  ;;  %v2737_v8 = vld [vmem:[%s3328_s1 + $0x27c] sm:$0xf0]  ;;  %v345_v37 = vld [vmem:[#allocation2 + $0x248] sm:$0xff] }
  0x6e   : > { %v2815_v4 = vld [vmem:[%s3328_s1 + $0x34] sm:$0xf]  ;;  %v2644_v5 = vor.u32 %v2863_v62, %v2641_v63  ;;  %v344_v30 = vld [vmem:[#allocation2 + $0x240] sm:$0xff]  ;;  %v349_v40 = vld [vmem:[#allocation2 + $0x268] sm:$0xff] }
  0x6f   : > { %4152 = vst [vmem:[#allocation13_spill] sm:$0xff] %v3547_v60  ;;  %v2887_v7 = vld [vmem:[%s3328_s1 + $0x274] sm:$0xf]  ;;  %v2452_v10 = vor.u32 %v2815_v4, %v2449_v6  ;;  %v348_v31 = vld [vmem:[#allocation2 + $0x260] sm:$0xff]  ;;  %v351_v62 = vld [vmem:[#allocation2 + $0x278] sm:$0xff] }
  0x70   : > { %v2740_v11 = vor.u32 %v2887_v7, %v2737_v8  ;;  %1651 = vmatpush.bf16.msrb.mxu2 %v2644_v5  ;;  %v2839_v38 = vld [vmem:[%s3328_s1 + $0xf4] sm:$0xf]  ;;  %v2545_v39 = vld [vmem:[%s3328_s1 + $0xfc] sm:$0xf0]  ;;  %v3567_v4 = vpack.c.bf16 %v348_v31, %v344_v30  ;;  %v3569_v8 = vpack.c.bf16 %v349_v40, %v345_v37 }
  0x71   : > { %1473 = vmatpush.bf16.msrb.mxu0 %v2452_v10  ;;  %v346_v41 = vld [vmem:[#allocation2 + $0x250] sm:$0xff]  ;;  %v356_v40 = vld [vmem:[#allocation2 + $0x2a0] sm:$0xff] }
  0x72   : > { %1740 = vmatpush.bf16.msrb.mxu3 %v2740_v11 }
  0x73   : > { %1130 = vmatmul.bf16.gmra.mxu0 %v3438_v24 }
  0x74   : > { %1219 = vmatmul.bf16.gmra.mxu1 %v3440_v25 }
  0x75   : > { %1308 = vmatmul.bf16.gmra.mxu2 %v3442_v26 }
  0x76   : > { %1397 = vmatmul.bf16.gmra.mxu3 %v3444_v27 }
  0x83   : > { %1135 = vmatmul.bf16.gmra.mxu0 %v3458_v49 }
  0x84   : > { %1224 = vmatmul.bf16.gmra.mxu1 %v3460_v50 }
  0x85   : > { %1313 = vmatmul.bf16.gmra.mxu2 %v3462_v54 }
  0x86   : > { %1402 = vmatmul.bf16.gmra.mxu3 %v3464_v55 }
  0x93   : > { %1140 = vmatmul.bf16.gmra.mxu0 %v3470_v0 }
  0x94   : > { %1229 = vmatmul.bf16.gmra.mxu1 %v3472_v1 }
  0x95   : > { %1318 = vmatmul.bf16.gmra.mxu2 %v3474_v2 }
  0x96   : > { %1407 = vmatmul.bf16.gmra.mxu3 %v3476_v3 }
  0xa3   : > { %1145 = vmatmul.bf16.gmra.mxu0 %v3490_v32 }
  0xa4   : > { %1234 = vmatmul.bf16.gmra.mxu1 %v3492_v33 }
  0xa5   : > { %1323 = vmatmul.bf16.gmra.mxu2 %v3494_v34 }
  0xa6   : > { %1412 = vmatmul.bf16.gmra.mxu3 %v3496_v35 }
  0xb3   : > { %1150 = vmatmul.bf16.gmra.mxu0 %v3502_v44 }
  0xb4   : > { %1239 = vmatmul.bf16.gmra.mxu1 %v3504_v45 }
  0xb5   : > { %1328 = vmatmul.bf16.gmra.mxu2 %v3506_v46 }
  0xb6   : > { %1417 = vmatmul.bf16.gmra.mxu3 %v3508_v48 }
  0xc3   : > { %1155 = vmatmul.bf16.gmra.mxu0 %v3522_v20 }
  0xc4   : > { %1244 = vmatmul.bf16.gmra.mxu1 %v3524_v21 }
  0xc5   : > { %1333 = vmatmul.bf16.gmra.mxu2 %v3526_v22 }
  0xc6   : > { %1422 = vmatmul.bf16.gmra.mxu3 %v3528_v23 }
  0xd0   : > { %v1121_v43 = vpop.f32.mrf.mxu0 }
  0xd1   : > { %v1122_v58 = vadd.f32 %v1121_v43, %v3538_v36  ;;  %v1210_v59 = vpop.f32.mrf.mxu1  ;;  %v350_v43 = vld [vmem:[#allocation2 + $0x270] sm:$0xff] }
  0xd3   : > { %1160 = vmatmul.bf16.gmra.mxu0 %v3540_v42  ;;  %v1211_v61 = vadd.f32 %v1210_v59, %v1122_v58  ;;  %v2548_v58 = vor.u32 %v2839_v38, %v2545_v39  ;;  %v352_v39 = vld [vmem:[#allocation2 + $0x280] sm:$0xff] }
  0xd4   : > { %1249 = vmatmul.bf16.gmra.mxu1 %v3542_v56 }
  0xd5   : > { %1338 = vmatmul.bf16.gmra.mxu2 %v3544_v57  ;;  %1562 = vmatpush.bf16.msrb.mxu1 %v2548_v58  ;;  %v354_v58 = vld [vmem:[#allocation2 + $0x290] sm:$0xff] }
  0xd6   : > { %1427 = vmatmul.bf16.gmra.mxu3 %v3547_v60 }
  0xd8   : > { %v1299_v9 = vpop.f32.mrf.mxu2  ;;  %v1123_v18 = vpop.f32.mrf.mxu0 }
  0xd9   : > { %v1300_v16 = vadd.f32 %v1299_v9, %v1211_v61  ;;  %v1388_v17 = vpop.f32.mrf.mxu3  ;;  %v1212_v19 = vpop.f32.mrf.mxu1  ;;  %v1124_v29 = vadd.f32 %v1123_v18, %v3538_v36  ;;  %v347_v61 = vld [vmem:[#allocation2 + $0x258] sm:$0xff]  ;;  %v3571_v9 = vpack.c.bf16 %v350_v43, %v346_v41  ;;  %v353_v41 = vld [vmem:[#allocation2 + $0x288] sm:$0xff] }
  0xda   : > { %v357_v43 = vld [vmem:[#allocation2 + $0x2a8] sm:$0xff] }
  0xdb   : > { %v1389_v28 = vadd.f32 %v1388_v17, %v1300_v16  ;;  %v1213_v59 = vadd.f32 %v1212_v19, %v1124_v29  ;;  %v3574_v16 = vpack.c.bf16 %v351_v62, %v347_v61  ;;  %v355_v62 = vld [vmem:[#allocation2 + $0x298] sm:$0xff] }
  0xdd   : > { %2180 = vst [vmem:[%s3562_s19] sm:$0xff] %v1389_v28 }
  0xe0   : > { %v1301_v63 = vpop.f32.mrf.mxu2  ;;  %v1126_v7 = vpop.f32.mrf.mxu0 }
  0xe1   : > { %v1302_v5 = vadd.f32 %v1301_v63, %v1213_v59  ;;  %v1390_v6 = vpop.f32.mrf.mxu3  ;;  %v1127_v10 = vadd.f32 %v1126_v7, %v3538_v36  ;;  %v1215_v11 = vpop.f32.mrf.mxu1  ;;  %v358_v59 = vld [vmem:[#allocation2 + $0x2b0] sm:$0xff]  ;;  %v359_v63 = vld [vmem:[#allocation2 + $0x2b8] sm:$0xff] }
  0xe3   : > { %v1391_v17 = vadd.f32 %v1390_v6, %v1302_v5  ;;  %1165 = vmatmul.bf16.gmra.mxu0 %v3567_v4  ;;  %v1216_v18 = vadd.f32 %v1215_v11, %v1127_v10  ;;  %v3583_v6 = vpack.c.bf16 %v356_v40, %v352_v39  ;;  %v2812_v39 = vld [vmem:[%s3328_s1 + $0x1c] sm:$0xf] }
  0xe4   : > { %1254 = vmatmul.bf16.gmra.mxu1 %v3569_v8 }
  0xe5   : > { %2183 = vst [vmem:[%s3562_s19 + $0x18] sm:$0xff] %v1391_v17  ;;  %1343 = vmatmul.bf16.gmra.mxu2 %v3571_v9  ;;  %v3585_v17 = vpack.c.bf16 %v357_v43, %v353_v41  ;;  %v2437_v41 = vld [vmem:[%s3328_s1 + $0x24] sm:$0xf0]  ;;  %v2884_v43 = vld [vmem:[%s3328_s1 + $0x25c] sm:$0xf] }
  0xe6   : > { %1432 = vmatmul.bf16.gmra.mxu3 %v3574_v16  ;;  %4153 = vst [vmem:[#allocation14_spill] sm:$0xff] %v3583_v6 }
  0xe7   : > { %4154 = vst [vmem:[#allocation15_spill] sm:$0xff] %v3585_v17 }
  0xe8   : > { %v1304_v19 = vpop.f32.mrf.mxu2  ;;  %v1128_v30 = vpop.f32.mrf.mxu0 }
  0xe9   : > { %v1305_v28 = vadd.f32 %v1304_v19, %v1216_v18  ;;  %v1393_v29 = vpop.f32.mrf.mxu3  ;;  %v1217_v31 = vpop.f32.mrf.mxu1  ;;  %v1129_v38 = vadd.f32 %v1128_v30, %v3538_v36  ;;  %v3587_v18 = vpack.c.bf16 %v358_v59, %v354_v58  ;;  %v2725_v58 = vld [vmem:[%s3328_s1 + $0x264] sm:$0xf0] }
  0xeb   : > { %v1394_v37 = vadd.f32 %v1393_v29, %v1305_v28  ;;  %v1218_v61 = vadd.f32 %v1217_v31, %v1129_v38  ;;  %4155 = vst [vmem:[#allocation16_spill] sm:$0xff] %v3587_v18  ;;  %v3590_v29 = vpack.c.bf16 %v359_v63, %v355_v62  ;;  %v2629_v38 = vld [vmem:[%s3328_s1 + $0x1a4] sm:$0xf0]  ;;  %v2728_v62 = vor.u32 %v2884_v43, %v2725_v58  ;;  %v363_v58 = vld [vmem:[#allocation2 + $0x2d8] sm:$0xff] }
  0xed   : > { %2186 = vst [vmem:[%s3562_s19 + $0x30] sm:$0xff] %v1394_v37  ;;  %v2860_v37 = vld [vmem:[%s3328_s1 + $0x19c] sm:$0xf]  ;;  %1741 = vmatpush.bf16.msrb.mxu3 %v2728_v62 }
  0xee   : > { %4156 = vst [vmem:[#allocation17_spill] sm:$0xff] %v3590_v29  ;;  %v2632_v40 = vor.u32 %v2860_v37, %v2629_v38  ;;  %v361_v37 = vld [vmem:[#allocation2 + $0x2c8] sm:$0xff]  ;;  %v2836_v38 = vld [vmem:[%s3328_s1 + $0xdc] sm:$0xf] }
  0xf0   : > { %v1306_v5 = vpop.f32.mrf.mxu2  ;;  %v1131_v11 = vpop.f32.mrf.mxu0  ;;  %1652 = vmatpush.bf16.msrb.mxu2 %v2632_v40  ;;  %v367_v40 = vld [vmem:[#allocation2 + $0x2f8] sm:$0xff] }
  0xf1   : > { %v1307_v7 = vadd.f32 %v1306_v5, %v1218_v61  ;;  %v1395_v10 = vpop.f32.mrf.mxu3  ;;  %v1132_v19 = vadd.f32 %v1131_v11, %v3538_v36  ;;  %v1220_v28 = vpop.f32.mrf.mxu1  ;;  %v2440_v61 = vor.u32 %v2812_v39, %v2437_v41  ;;  %v362_v39 = vld [vmem:[#allocation2 + $0x2d0] sm:$0xff] }
  0xf2   : > { %v366_v41 = vld [vmem:[#allocation2 + $0x2f0] sm:$0xff] }
  0xf3   : > { %v1396_v30 = vadd.f32 %v1395_v10, %v1307_v7  ;;  %1170 = vmatmul.bf16.gmra.mxu0 %v3583_v6  ;;  %v1221_v31 = vadd.f32 %v1220_v28, %v1132_v19  ;;  %v360_v28 = vld [vmem:[#allocation2 + $0x2c0] sm:$0xff] }
  0xf4   : > { %1259 = vmatmul.bf16.gmra.mxu1 %v3585_v17  ;;  %1474 = vmatpush.bf16.msrb.mxu0 %v2440_v61 }
  0xf5   : > { %2189 = vst [vmem:[%s3562_s19 + $0x48] sm:$0xff] %v1396_v30  ;;  %1348 = vmatmul.bf16.gmra.mxu2 %v3587_v18  ;;  %v364_v30 = vld [vmem:[#allocation2 + $0x2e0] sm:$0xff]  ;;  %v365_v18 = vld [vmem:[#allocation2 + $0x2e8] sm:$0xff] }
  0xf6   : > { %1437 = vmatmul.bf16.gmra.mxu3 %v3590_v29  ;;  %v2533_v29 = vld [vmem:[%s3328_s1 + $0xe4] sm:$0xf0]  ;;  %v3607_v61 = vpack.c.bf16 %v364_v30, %v360_v28 }
  0xf7   : > { %v2536_v43 = vor.u32 %v2836_v38, %v2533_v29  ;;  %v3614_v29 = vpack.c.bf16 %v367_v40, %v363_v58  ;;  %v369_v58 = vld [vmem:[#allocation2 + $0x308] sm:$0xff] }
  0xf8   : > { %v1309_v59 = vpop.f32.mrf.mxu2  ;;  %v1133_v7 = vpop.f32.mrf.mxu0  ;;  %4157 = vst [vmem:[#allocation18_spill] sm:$0xff] %v3607_v61  ;;  %v373_v40 = vld [vmem:[#allocation2 + $0x328] sm:$0xff] }
  0xf9   : > { %v1310_v63 = vadd.f32 %v1309_v59, %v1221_v31  ;;  %v1398_v5 = vpop.f32.mrf.mxu3  ;;  %v1222_v10 = vpop.f32.mrf.mxu1  ;;  %v1134_v19 = vadd.f32 %v1133_v7, %v3538_v36  ;;  %1563 = vmatpush.bf16.msrb.mxu1 %v2536_v43  ;;  %v3609_v7 = vpack.c.bf16 %v365_v18, %v361_v37  ;;  %4160 = vst [vmem:[#allocation21_spill] sm:$0xff] %v3614_v29  ;;  %v368_v43 = vld [vmem:[#allocation2 + $0x300] sm:$0xff] }
  0xfb   : > { %v1399_v11 = vadd.f32 %v1398_v5, %v1310_v63  ;;  %v1223_v31 = vadd.f32 %v1222_v10, %v1134_v19  ;;  %4158 = vst [vmem:[#allocation19_spill] sm:$0xff] %v3609_v7 }
  0xfd   : > { %2192 = vst [vmem:[%s3562_s19 + $0x60] sm:$0xff] %v1399_v11  ;;  %v3611_v11 = vpack.c.bf16 %v366_v41, %v362_v39 }
  0xff   : > { %4159 = vst [vmem:[#allocation20_spill] sm:$0xff] %v3611_v11 }
 0x100   : > { %v1311_v59 = vpop.f32.mrf.mxu2  ;;  %v1136_v5 = vpop.f32.mrf.mxu0 }
 0x101   : > { %v1312_v62 = vadd.f32 %v1311_v59, %v1223_v31  ;;  %v1400_v63 = vpop.f32.mrf.mxu3  ;;  %v1137_v17 = vadd.f32 %v1136_v5, %v3538_v36  ;;  %v1225_v6 = vpop.f32.mrf.mxu1  ;;  %v372_v31 = vld [vmem:[#allocation2 + $0x320] sm:$0xff] }
 0x103   : > { %v1401_v10 = vadd.f32 %v1400_v63, %v1312_v62  ;;  %1175 = vmatmul.bf16.gmra.mxu0 %v3607_v61  ;;  %v1226_v19 = vadd.f32 %v1225_v6, %v1137_v17  ;;  %v370_v6 = vld [vmem:[#allocation2 + $0x310] sm:$0xff]  ;;  %v371_v62 = vld [vmem:[#allocation2 + $0x318] sm:$0xff] }
 0x104   : > { %1264 = vmatmul.bf16.gmra.mxu1 %v3609_v7  ;;  %v374_v17 = vld [vmem:[#allocation2 + $0x330] sm:$0xff]  ;;  %v375_v63 = vld [vmem:[#allocation2 + $0x338] sm:$0xff] }
 0x105   : > { %2195 = vst [vmem:[%s3562_s19 + $0x78] sm:$0xff] %v1401_v10  ;;  %1353 = vmatmul.bf16.gmra.mxu2 %v3611_v11  ;;  %v3623_v10 = vpack.c.bf16 %v372_v31, %v368_v43  ;;  %v381_v11 = vld [vmem:[#allocation2 + $0x368] sm:$0xff] }
 0x106   : > { %1442 = vmatmul.bf16.gmra.mxu3 %v3614_v29  ;;  %v2521_v29 = vld [vmem:[%s3328_s1 + $0xcc] sm:$0xf0] }
 0x107   : > { %4161 = vst [vmem:[#allocation22_spill] sm:$0xff] %v3623_v10 }
 0x108   : > { %v1314_v18 = vpop.f32.mrf.mxu2  ;;  %v1138_v37 = vpop.f32.mrf.mxu0 }
 0x109   : > { %v1315_v28 = vadd.f32 %v1314_v18, %v1226_v19  ;;  %v1403_v30 = vpop.f32.mrf.mxu3  ;;  %v1227_v38 = vpop.f32.mrf.mxu1  ;;  %v1139_v41 = vadd.f32 %v1138_v37, %v3538_v36  ;;  %v3627_v37 = vpack.c.bf16 %v374_v17, %v370_v6  ;;  %v2809_v6 = vld [vmem:[%s3328_s1 + $0x4] sm:$0xf] }
 0x10b   : > { %v1404_v39 = vadd.f32 %v1403_v30, %v1315_v28  ;;  %v1228_v59 = vadd.f32 %v1227_v38, %v1139_v41  ;;  %v3625_v30 = vpack.c.bf16 %v373_v40, %v369_v58  ;;  %4163 = vst [vmem:[#allocation24_spill] sm:$0xff] %v3627_v37  ;;  %v3630_v41 = vpack.c.bf16 %v375_v63, %v371_v62  ;;  %v2857_v58 = vld [vmem:[%s3328_s1 + $0x184] sm:$0xf]  ;;  %v2617_v40 = vld [vmem:[%s3328_s1 + $0x18c] sm:$0xf0] }
 0x10c   : > { %v2620_v17 = vor.u32 %v2857_v58, %v2617_v40  ;;  %v2713_v62 = vld [vmem:[%s3328_s1 + $0x24c] sm:$0xf0]  ;;  %v376_v58 = vld [vmem:[#allocation2 + $0x340] sm:$0xff] }
 0x10d   : > { %2198 = vst [vmem:[%s3562_s19 + $0x90] sm:$0xff] %v1404_v39  ;;  %v380_v40 = vld [vmem:[#allocation2 + $0x360] sm:$0xff] }
 0x10e   : > { %4162 = vst [vmem:[#allocation23_spill] sm:$0xff] %v3625_v30  ;;  %1653 = vmatpush.bf16.msrb.mxu2 %v2620_v17  ;;  %v383_v17 = vld [vmem:[#allocation2 + $0x378] sm:$0xff] }
 0x10f   : > { %4164 = vst [vmem:[#allocation25_spill] sm:$0xff] %v3630_v41 }
 0x110   : > { %v1316_v5 = vpop.f32.mrf.mxu2  ;;  %v1141_v28 = vpop.f32.mrf.mxu0 }
 0x111   : > { %v1317_v19 = vadd.f32 %v1316_v5, %v1228_v59  ;;  %v1405_v18 = vpop.f32.mrf.mxu3  ;;  %v1142_v39 = vadd.f32 %v1141_v28, %v3538_v36  ;;  %v1230_v38 = vpop.f32.mrf.mxu1  ;;  %v2425_v59 = vld [vmem:[%s3328_s1 + $0xc] sm:$0xf0]  ;;  %v2881_v5 = vld [vmem:[%s3328_s1 + $0x244] sm:$0xf] }
 0x113   : > { %v1406_v43 = vadd.f32 %v1405_v18, %v1317_v19  ;;  %1180 = vmatmul.bf16.gmra.mxu0 %v3623_v10  ;;  %v1231_v31 = vadd.f32 %v1230_v38, %v1142_v39  ;;  %v2428_v19 = vor.u32 %v2809_v6, %v2425_v59  ;;  %v2716_v18 = vor.u32 %v2881_v5, %v2713_v62  ;;  %v2833_v10 = vld [vmem:[%s3328_s1 + $0xc4] sm:$0xf]  ;;  %v378_v6 = vld [vmem:[#allocation2 + $0x350] sm:$0xff]  ;;  %v379_v62 = vld [vmem:[#allocation2 + $0x358] sm:$0xff] }
 0x114   : > { %1269 = vmatmul.bf16.gmra.mxu1 %v3625_v30  ;;  %v377_v30 = vld [vmem:[#allocation2 + $0x348] sm:$0xff]  ;;  %v382_v59 = vld [vmem:[#allocation2 + $0x370] sm:$0xff]  ;;  %v2524_v5 = vor.u32 %v2833_v10, %v2521_v29  ;;  %v3654_v29 = vpack.c.bf16 %v383_v17, %v379_v62 }
 0x115   : > { %2201 = vst [vmem:[%s3562_s19 + $0xa8] sm:$0xff] %v1406_v43  ;;  %1358 = vmatmul.bf16.gmra.mxu2 %v3627_v37  ;;  %1475 = vmatpush.bf16.msrb.mxu0 %v2428_v19  ;;  %v3647_v19 = vpack.c.bf16 %v380_v40, %v376_v58  ;;  %v385_v62 = vld [vmem:[#allocation2 + $0x388] sm:$0xff] }
 0x116   : > { %1447 = vmatmul.bf16.gmra.mxu3 %v3630_v41  ;;  %1564 = vmatpush.bf16.msrb.mxu1 %v2524_v5  ;;  %4168 = vst [vmem:[#allocation29_spill] sm:$0xff] %v3654_v29  ;;  %v384_v5 = vld [vmem:[#allocation2 + $0x380] sm:$0xff]  ;;  %v389_v17 = vld [vmem:[#allocation2 + $0x3a8] sm:$0xff] }
 0x117   : > { %1742 = vmatpush.bf16.msrb.mxu3 %v2716_v18  ;;  %4165 = vst [vmem:[#allocation26_spill] sm:$0xff] %v3647_v19 }
 0x118   : > { %v1319_v63 = vpop.f32.mrf.mxu2  ;;  %v1143_v38 = vpop.f32.mrf.mxu0 }
 0x119   : > { %v1320_v28 = vadd.f32 %v1319_v63, %v1231_v31  ;;  %v1408_v39 = vpop.f32.mrf.mxu3  ;;  %v1232_v43 = vpop.f32.mrf.mxu1  ;;  %v1144_v37 = vadd.f32 %v1143_v38, %v3538_v36  ;;  %v3649_v38 = vpack.c.bf16 %v381_v11, %v377_v30 }
 0x11b   : > { %v1409_v41 = vadd.f32 %v1408_v39, %v1320_v28  ;;  %v1233_v31 = vadd.f32 %v1232_v43, %v1144_v37  ;;  %4166 = vst [vmem:[#allocation27_spill] sm:$0xff] %v3649_v38 }
 0x11d   : > { %2204 = vst [vmem:[%s3562_s19 + $0xc0] sm:$0xff] %v1409_v41  ;;  %v3651_v41 = vpack.c.bf16 %v382_v59, %v378_v6 }
 0x11f   : > { %4167 = vst [vmem:[#allocation28_spill] sm:$0xff] %v3651_v41 }
 0x120   : > { %v1321_v63 = vpop.f32.mrf.mxu2  ;;  %v1146_v39 = vpop.f32.mrf.mxu0 }
 0x121   : > { %v1322_v18 = vadd.f32 %v1321_v63, %v1233_v31  ;;  %v1410_v28 = vpop.f32.mrf.mxu3  ;;  %v1147_v7 = vadd.f32 %v1146_v39, %v3538_v36  ;;  %v1235_v61 = vpop.f32.mrf.mxu1  ;;  %v388_v31 = vld [vmem:[#allocation2 + $0x3a0] sm:$0xff] }
 0x123   : > { %v1411_v10 = vadd.f32 %v1410_v28, %v1322_v18  ;;  %1185 = vmatmul.bf16.gmra.mxu0 %v3647_v19  ;;  %v1236_v37 = vadd.f32 %v1235_v61, %v1147_v7  ;;  %v386_v61 = vld [vmem:[#allocation2 + $0x390] sm:$0xff]  ;;  %v387_v18 = vld [vmem:[#allocation2 + $0x398] sm:$0xff] }
 0x124   : > { %1274 = vmatmul.bf16.gmra.mxu1 %v3649_v38  ;;  %v390_v7 = vld [vmem:[#allocation2 + $0x3b0] sm:$0xff]  ;;  %v391_v28 = vld [vmem:[#allocation2 + $0x3b8] sm:$0xff] }
 0x125   : > { %2207 = vst [vmem:[%s3562_s19 + $0xd8] sm:$0xff] %v1411_v10  ;;  %1363 = vmatmul.bf16.gmra.mxu2 %v3651_v41  ;;  %v3663_v10 = vpack.c.bf16 %v388_v31, %v384_v5  ;;  %v397_v41 = vld [vmem:[#allocation2 + $0x3e8] sm:$0xff] }
 0x126   : > { %1452 = vmatmul.bf16.gmra.mxu3 %v3654_v29  ;;  %v2856_v29 = vld [vmem:[%s3328_s1 + $0x178] sm:$0xf0] }
 0x127   : > { %4169 = vst [vmem:[#allocation30_spill] sm:$0xff] %v3663_v10 }
 0x128   : > { %v1324_v11 = vpop.f32.mrf.mxu2  ;;  %v1148_v58 = vpop.f32.mrf.mxu0 }
 0x129   : > { %v1325_v30 = vadd.f32 %v1324_v11, %v1236_v37  ;;  %v1413_v43 = vpop.f32.mrf.mxu3  ;;  %v1237_v40 = vpop.f32.mrf.mxu1  ;;  %v1149_v59 = vadd.f32 %v1148_v58, %v3538_v36  ;;  %v3667_v58 = vpack.c.bf16 %v390_v7, %v386_v61  ;;  %v2515_v61 = vld [vmem:[%s3328_s1 + $0xb0] sm:$0xf] }
 0x12b   : > { %v1414_v6 = vadd.f32 %v1413_v43, %v1325_v30  ;;  %v1238_v63 = vadd.f32 %v1237_v40, %v1149_v59  ;;  %v3665_v43 = vpack.c.bf16 %v389_v17, %v385_v62  ;;  %4171 = vst [vmem:[#allocation32_spill] sm:$0xff] %v3667_v58  ;;  %v3670_v59 = vpack.c.bf16 %v391_v28, %v387_v18  ;;  %v2707_v62 = vld [vmem:[%s3328_s1 + $0x230] sm:$0xf]  ;;  %v2880_v17 = vld [vmem:[%s3328_s1 + $0x238] sm:$0xf0] }
 0x12c   : > { %v2708_v7 = vor.u32 %v2880_v17, %v2707_v62  ;;  %v2904_v18 = vld [vmem:[%s3328_s1 + $0x2f8] sm:$0xf0]  ;;  %v392_v62 = vld [vmem:[#allocation2 + $0x3c0] sm:$0xff] }
 0x12d   : > { %2210 = vst [vmem:[%s3562_s19 + $0xf0] sm:$0xff] %v1414_v6  ;;  %v396_v17 = vld [vmem:[#allocation2 + $0x3e0] sm:$0xff] }
 0x12e   : > { %4170 = vst [vmem:[#allocation31_spill] sm:$0xff] %v3665_v43  ;;  %2002 = vmatpush.bf16.msra.mxu2 %v2708_v7  ;;  %v399_v7 = vld [vmem:[#allocation2 + $0x3f8] sm:$0xff] }
 0x12f   : > { %4172 = vst [vmem:[#allocation33_spill] sm:$0xff] %v3670_v59 }
 0x130   : > { %v1326_v39 = vpop.f32.mrf.mxu2  ;;  %v1151_v30 = vpop.f32.mrf.mxu0 }
 0x131   : > { %v1327_v37 = vadd.f32 %v1326_v39, %v1238_v63  ;;  %v1415_v11 = vpop.f32.mrf.mxu3  ;;  %v1152_v6 = vadd.f32 %v1151_v30, %v3538_v36  ;;  %v1240_v40 = vpop.f32.mrf.mxu1  ;;  %v2832_v63 = vld [vmem:[%s3328_s1 + $0xb8] sm:$0xf0]  ;;  %v2803_v39 = vld [vmem:[%s3328_s1 + $0x2f0] sm:$0xf] }
 0x133   : > { %v1416_v5 = vadd.f32 %v1415_v11, %v1327_v37  ;;  %1190 = vmatmul.bf16.gmra.mxu0 %v3663_v10  ;;  %v1241_v31 = vadd.f32 %v1240_v40, %v1152_v6  ;;  %v2516_v37 = vor.u32 %v2832_v63, %v2515_v61  ;;  %v2804_v11 = vor.u32 %v2904_v18, %v2803_v39  ;;  %v2611_v10 = vld [vmem:[%s3328_s1 + $0x170] sm:$0xf]  ;;  %v395_v18 = vld [vmem:[#allocation2 + $0x3d8] sm:$0xff] }
 0x134   : > { %1279 = vmatmul.bf16.gmra.mxu1 %v3665_v43  ;;  %v393_v43 = vld [vmem:[#allocation2 + $0x3c8] sm:$0xff]  ;;  %v394_v61 = vld [vmem:[#allocation2 + $0x3d0] sm:$0xff]  ;;  %v2612_v39 = vor.u32 %v2856_v29, %v2611_v10  ;;  %v3694_v29 = vpack.c.bf16 %v399_v7, %v395_v18 }
 0x135   : > { %2213 = vst [vmem:[%s3562_s19 + $0x108] sm:$0xff] %v1416_v5  ;;  %1368 = vmatmul.bf16.gmra.mxu2 %v3667_v58  ;;  %1824 = vmatpush.bf16.msra.mxu0 %v2516_v37  ;;  %v398_v63 = vld [vmem:[#allocation2 + $0x3f0] sm:$0xff]  ;;  %v3687_v37 = vpack.c.bf16 %v396_v17, %v392_v62 }
 0x136   : > { %1457 = vmatmul.bf16.gmra.mxu3 %v3670_v59  ;;  %1913 = vmatpush.bf16.msra.mxu1 %v2612_v39 }
 0x137   : > { %2091 = vmatpush.bf16.msra.mxu3 %v2804_v11 }
 0x138   : > { %v1329_v28 = vpop.f32.mrf.mxu2  ;;  %v1153_v40 = vpop.f32.mrf.mxu0 }
 0x139   : > { %v1330_v30 = vadd.f32 %v1329_v28, %v1241_v31  ;;  %v1418_v6 = vpop.f32.mrf.mxu3  ;;  %v1242_v5 = vpop.f32.mrf.mxu1  ;;  %v1154_v58 = vadd.f32 %v1153_v40, %v3538_v36  ;;  %v3689_v40 = vpack.c.bf16 %v397_v41, %v393_v43 }
 0x13b   : > { %v1419_v59 = vadd.f32 %v1418_v6, %v1330_v30  ;;  %v1243_v31 = vadd.f32 %v1242_v5, %v1154_v58 }
 0x13d   : > { %2216 = vst [vmem:[%s3562_s19 + $0x120] sm:$0xff] %v1419_v59  ;;  %v3691_v59 = vpack.c.bf16 %v398_v63, %v394_v61 }
 0x140   : > { %v1331_v28 = vpop.f32.mrf.mxu2  ;;  %v1156_v6 = vpop.f32.mrf.mxu0 }
 0x141   : > { %v1332_v11 = vadd.f32 %v1331_v28, %v1243_v31  ;;  %v1420_v30 = vpop.f32.mrf.mxu3  ;;  %v1157_v38 = vadd.f32 %v1156_v6, %v3538_v36  ;;  %v1245_v19 = vpop.f32.mrf.mxu1  ;;  %v2695_v6 = vld [vmem:[%s3328_s1 + $0x218] sm:$0xf] }
 0x143   : > { %v1421_v10 = vadd.f32 %v1420_v30, %v1332_v11  ;;  %1195 = vmatmul.bf16.gmra.mxu0 %v3687_v37  ;;  %v1246_v58 = vadd.f32 %v1245_v19, %v1157_v38 }
 0x144   : > { %1284 = vmatmul.bf16.gmra.mxu1 %v3689_v40 }
 0x145   : > { %2219 = vst [vmem:[%s3562_s19 + $0x138] sm:$0xff] %v1421_v10  ;;  %1373 = vmatmul.bf16.gmra.mxu2 %v3691_v59  ;;  %v2877_v10 = vld [vmem:[%s3328_s1 + $0x220] sm:$0xf0] }
 0x146   : > { %1462 = vmatmul.bf16.gmra.mxu3 %v3694_v29 }
 0x148   : > { %v1334_v41 = vpop.f32.mrf.mxu2  ;;  %v1158_v62 = vpop.f32.mrf.mxu0 }
 0x149   : > { %v1335_v43 = vadd.f32 %v1334_v41, %v1246_v58  ;;  %v1423_v5 = vpop.f32.mrf.mxu3  ;;  %v1247_v17 = vpop.f32.mrf.mxu1  ;;  %v1159_v63 = vadd.f32 %v1158_v62, %v3538_v36  ;;  %v2503_v58 = vld [vmem:[%s3328_s1 + $0x98] sm:$0xf]  ;;  %v2696_v41 = vor.u32 %v2877_v10, %v2695_v6  ;;  %v2901_v62 = vld [vmem:[%s3328_s1 + $0x2e0] sm:$0xf0] }
 0x14b   : > { %v1424_v61 = vadd.f32 %v1423_v5, %v1335_v43  ;;  %v1248_v39 = vadd.f32 %v1247_v17, %v1159_v63  ;;  %v2829_v43 = vld [vmem:[%s3328_s1 + $0xa0] sm:$0xf0]  ;;  %v2791_v5 = vld [vmem:[%s3328_s1 + $0x2d8] sm:$0xf]  ;;  %2003 = vmatpush.bf16.msra.mxu2 %v2696_v41 }
 0x14c   : > { %v2792_v63 = vor.u32 %v2901_v62, %v2791_v5 }
 0x14d   : > { %2222 = vst [vmem:[%s3562_s19 + $0x150] sm:$0xff] %v1424_v61  ;;  %v2504_v61 = vor.u32 %v2829_v43, %v2503_v58 }
 0x14e   : > { %2092 = vmatpush.bf16.msra.mxu3 %v2792_v63 }
 0x14f   : > { %1825 = vmatpush.bf16.msra.mxu0 %v2504_v61 }
 0x150   : > { %v1336_v19 = vpop.f32.mrf.mxu2  ;;  %v1161_v18 = vpop.f32.mrf.mxu0 }
 0x151   : > { %v1337_v38 = vadd.f32 %v1336_v19, %v1248_v39  ;;  %v1425_v31 = vpop.f32.mrf.mxu3  ;;  %v1162_v7 = vadd.f32 %v1161_v18, %v3538_v36  ;;  %v1250_v28 = vpop.f32.mrf.mxu1 }
 0x153   : > { %v1426_v11 = vadd.f32 %v1425_v31, %v1337_v38  ;;  %1476 = vmatmul.bf16.vlgmr.msrb.gmra.mxu0 %v3404_v47  ;;  %v1251_v30 = vadd.f32 %v1250_v28, %v1162_v7  ;;  %v2599_v28 = vld [vmem:[%s3328_s1 + $0x158] sm:$0xf] }
 0x154   : > { %1565 = vmatmul.bf16.vlgmr.msrb.gmra.mxu1 %v3408_v51 }
 0x155   : > { %2225 = vst [vmem:[%s3562_s19 + $0x168] sm:$0xff] %v1426_v11  ;;  %1654 = vmatmul.bf16.vlgmr.msrb.gmra.mxu2 %v3410_v52  ;;  %v2853_v11 = vld [vmem:[%s3328_s1 + $0x160] sm:$0xf0] }
 0x156   : > { %1743 = vmatmul.bf16.vlgmr.msrb.gmra.mxu3 %v3412_v53  ;;  %v2600_v6 = vor.u32 %v2853_v11, %v2599_v28 }
 0x158   : > { %v1339_v17 = vpop.f32.mrf.mxu2  ;;  %v1163_v38 = vpop.f32.mrf.mxu0  ;;  %1914 = vmatpush.bf16.msra.mxu1 %v2600_v6 }
 0x159   : > { %v1340_v39 = vadd.f32 %v1339_v17, %v1251_v30  ;;  %v1428_v19 = vpop.f32.mrf.mxu3  ;;  %v1252_v31 = vpop.f32.mrf.mxu1  ;;  %v1164_v7 = vadd.f32 %v1163_v38, %v3538_v36 }
 0x15b   : > { %v1429_v18 = vadd.f32 %v1428_v19, %v1340_v39  ;;  %v1253_v10 = vadd.f32 %v1252_v31, %v1164_v7 }
 0x15d   : > { %2228 = vst [vmem:[%s3562_s19 + $0x180] sm:$0xff] %v1429_v18 }
 0x160   : > { %v1341_v53 = vpop.f32.mrf.mxu2  ;;  %v1166_v30 = vpop.f32.mrf.mxu0 }
 0x161   : > { %v1342_v58 = vadd.f32 %v1341_v53, %v1253_v10  ;;  %v1430_v43 = vpop.f32.mrf.mxu3  ;;  %v1167_v5 = vadd.f32 %v1166_v30, %v3538_v36  ;;  %v1255_v41 = vpop.f32.mrf.mxu1 }
 0x163   : > { %v1431_v62 = vadd.f32 %v1430_v43, %v1342_v58  ;;  %1481 = vmatmul.bf16.gmra.mxu0 %v3426_v12  ;;  %v1256_v17 = vadd.f32 %v1255_v41, %v1167_v5  ;;  %v2683_v5 = vld [vmem:[%s3328_s1 + $0x200] sm:$0xf]  ;;  %v2874_v41 = vld [vmem:[%s3328_s1 + $0x208] sm:$0xf0] }
 0x164   : > { %1570 = vmatmul.bf16.gmra.mxu1 %v3428_v13 }
 0x165   : > { %2231 = vst [vmem:[%s3562_s19 + $0x198] sm:$0xff] %v1431_v62  ;;  %1659 = vmatmul.bf16.gmra.mxu2 %v3430_v14  ;;  %v2491_v62 = vld [vmem:[%s3328_s1 + $0x80] sm:$0xf] }
 0x166   : > { %1748 = vmatmul.bf16.gmra.mxu3 %v3432_v15 }
 0x168   : > { %v1344_v61 = vpop.f32.mrf.mxu2  ;;  %v1168_v39 = vpop.f32.mrf.mxu0 }
 0x169   : > { %v1345_v63 = vadd.f32 %v1344_v61, %v1256_v17  ;;  %v1433_v53 = vpop.f32.mrf.mxu3  ;;  %v1257_v19 = vpop.f32.mrf.mxu1  ;;  %v1169_v31 = vadd.f32 %v1168_v39, %v3538_v36  ;;  %v2684_v17 = vor.u32 %v2874_v41, %v2683_v5  ;;  %v2826_v61 = vld [vmem:[%s3328_s1 + $0x88] sm:$0xf0] }
 0x16b   : > { %v1434_v38 = vadd.f32 %v1433_v53, %v1345_v63  ;;  %v1258_v18 = vadd.f32 %v1257_v19, %v1169_v31  ;;  %v2779_v63 = vld [vmem:[%s3328_s1 + $0x2c0] sm:$0xf]  ;;  %v2898_v53 = vld [vmem:[%s3328_s1 + $0x2c8] sm:$0xf0]  ;;  %v2492_v19 = vor.u32 %v2826_v61, %v2491_v62  ;;  %2004 = vmatpush.bf16.msra.mxu2 %v2684_v17 }
 0x16d   : > { %2234 = vst [vmem:[%s3562_s19 + $0x1b0] sm:$0xff] %v1434_v38  ;;  %v2780_v38 = vor.u32 %v2898_v53, %v2779_v63  ;;  %1826 = vmatpush.bf16.msra.mxu0 %v2492_v19 }
 0x16f   : > { %2093 = vmatpush.bf16.msra.mxu3 %v2780_v38 }
 0x170   : > { %v1346_v7 = vpop.f32.mrf.mxu2  ;;  %v1171_v6 = vpop.f32.mrf.mxu0 }
 0x171   : > { %v1347_v28 = vadd.f32 %v1346_v7, %v1258_v18  ;;  %v1435_v11 = vpop.f32.mrf.mxu3  ;;  %v1172_v10 = vadd.f32 %v1171_v6, %v3538_v36  ;;  %v1260_v58 = vpop.f32.mrf.mxu1 }
 0x173   : > { %v1436_v43 = vadd.f32 %v1435_v11, %v1347_v28  ;;  %1486 = vmatmul.bf16.gmra.mxu0 %v3438_v24  ;;  %v1261_v30 = vadd.f32 %v1260_v58, %v1172_v10  ;;  %v2587_v10 = vld [vmem:[%s3328_s1 + $0x140] sm:$0xf]  ;;  %v2850_v58 = vld [vmem:[%s3328_s1 + $0x148] sm:$0xf0] }
 0x174   : > { %1575 = vmatmul.bf16.gmra.mxu1 %v3440_v25 }
 0x175   : > { %2237 = vst [vmem:[%s3562_s19 + $0x1c8] sm:$0xff] %v1436_v43  ;;  %1664 = vmatmul.bf16.gmra.mxu2 %v3442_v26  ;;  %v2588_v43 = vor.u32 %v2850_v58, %v2587_v10 }
 0x176   : > { %1753 = vmatmul.bf16.gmra.mxu3 %v3444_v27 }
 0x177   : > { %1915 = vmatpush.bf16.msra.mxu1 %v2588_v43 }
 0x178   : > { %v1349_v39 = vpop.f32.mrf.mxu2  ;;  %v1173_v7 = vpop.f32.mrf.mxu0 }
 0x179   : > { %v1350_v31 = vadd.f32 %v1349_v39, %v1261_v30  ;;  %v1438_v18 = vpop.f32.mrf.mxu3  ;;  %v1262_v28 = vpop.f32.mrf.mxu1  ;;  %v1174_v6 = vadd.f32 %v1173_v7, %v3538_v36 }
 0x17b   : > { %v1439_v11 = vadd.f32 %v1438_v18, %v1350_v31  ;;  %v1263_v5 = vadd.f32 %v1262_v28, %v1174_v6 }
 0x17d   : > { %2240 = vst [vmem:[%s3562_s19 + $0x1e0] sm:$0xff] %v1439_v11 }
 0x180   : > { %v1351_v41 = vpop.f32.mrf.mxu2  ;;  %v1176_v30 = vpop.f32.mrf.mxu0 }
 0x181   : > { %v1352_v62 = vadd.f32 %v1351_v41, %v1263_v5  ;;  %v1440_v61 = vpop.f32.mrf.mxu3  ;;  %v1177_v63 = vadd.f32 %v1176_v30, %v3538_v36  ;;  %v1265_v17 = vpop.f32.mrf.mxu1 }
 0x183   : > { %v1441_v53 = vadd.f32 %v1440_v61, %v1352_v62  ;;  %1491 = vmatmul.bf16.gmra.mxu0 %v3458_v49  ;;  %v1266_v39 = vadd.f32 %v1265_v17, %v1177_v63  ;;  %v2671_v63 = vld [vmem:[%s3328_s1 + $0x1e8] sm:$0xf]  ;;  %v2871_v17 = vld [vmem:[%s3328_s1 + $0x1f0] sm:$0xf0] }
 0x184   : > { %1580 = vmatmul.bf16.gmra.mxu1 %v3460_v50 }
 0x185   : > { %2243 = vst [vmem:[%s3562_s19 + $0x1f8] sm:$0xff] %v1441_v53  ;;  %1669 = vmatmul.bf16.gmra.mxu2 %v3462_v54  ;;  %v2479_v53 = vld [vmem:[%s3328_s1 + $0x68] sm:$0xf] }
 0x186   : > { %1758 = vmatmul.bf16.gmra.mxu3 %v3464_v55 }
 0x188   : > { %v1354_v19 = vpop.f32.mrf.mxu2  ;;  %v1178_v18 = vpop.f32.mrf.mxu0 }
 0x189   : > { %v1355_v38 = vadd.f32 %v1354_v19, %v1266_v39  ;;  %v1443_v31 = vpop.f32.mrf.mxu3  ;;  %v1267_v7 = vpop.f32.mrf.mxu1  ;;  %v1179_v11 = vadd.f32 %v1178_v18, %v3538_v36  ;;  %v2672_v39 = vor.u32 %v2871_v17, %v2671_v63  ;;  %v2823_v19 = vld [vmem:[%s3328_s1 + $0x70] sm:$0xf0] }
 0x18b   : > { %v1444_v28 = vadd.f32 %v1443_v31, %v1355_v38  ;;  %v1268_v6 = vadd.f32 %v1267_v7, %v1179_v11  ;;  %v2767_v38 = vld [vmem:[%s3328_s1 + $0x2a8] sm:$0xf]  ;;  %v2895_v31 = vld [vmem:[%s3328_s1 + $0x2b0] sm:$0xf0]  ;;  %v2480_v7 = vor.u32 %v2823_v19, %v2479_v53  ;;  %2005 = vmatpush.bf16.msra.mxu2 %v2672_v39 }
 0x18d   : > { %2246 = vst [vmem:[%s3562_s19 + $0x210] sm:$0xff] %v1444_v28  ;;  %v2768_v28 = vor.u32 %v2895_v31, %v2767_v38  ;;  %1827 = vmatpush.bf16.msra.mxu0 %v2480_v7 }
 0x18f   : > { %2094 = vmatpush.bf16.msra.mxu3 %v2768_v28 }
 0x190   : > { %v1356_v10 = vpop.f32.mrf.mxu2  ;;  %v1181_v5 = vpop.f32.mrf.mxu0 }
 0x191   : > { %v1357_v58 = vadd.f32 %v1356_v10, %v1268_v6  ;;  %v1445_v43 = vpop.f32.mrf.mxu3  ;;  %v1182_v41 = vadd.f32 %v1181_v5, %v3538_v36  ;;  %v1270_v62 = vpop.f32.mrf.mxu1 }
 0x193   : > { %v1446_v61 = vadd.f32 %v1445_v43, %v1357_v58  ;;  %1496 = vmatmul.bf16.gmra.mxu0 %v3470_v0  ;;  %v1271_v30 = vadd.f32 %v1270_v62, %v1182_v41  ;;  %v2575_v41 = vld [vmem:[%s3328_s1 + $0x128] sm:$0xf]  ;;  %v2847_v62 = vld [vmem:[%s3328_s1 + $0x130] sm:$0xf0] }
 0x194   : > { %1585 = vmatmul.bf16.gmra.mxu1 %v3472_v1 }
 0x195   : > { %2249 = vst [vmem:[%s3562_s19 + $0x228] sm:$0xff] %v1446_v61  ;;  %1674 = vmatmul.bf16.gmra.mxu2 %v3474_v2  ;;  %v2576_v61 = vor.u32 %v2847_v62, %v2575_v41 }
 0x196   : > { %1763 = vmatmul.bf16.gmra.mxu3 %v3476_v3 }
 0x197   : > { %1916 = vmatpush.bf16.msra.mxu1 %v2576_v61 }
 0x198   : > { %v1359_v18 = vpop.f32.mrf.mxu2  ;;  %v1183_v10 = vpop.f32.mrf.mxu0 }
 0x199   : > { %v1360_v11 = vadd.f32 %v1359_v18, %v1271_v30  ;;  %v1448_v6 = vpop.f32.mrf.mxu3  ;;  %v1272_v58 = vpop.f32.mrf.mxu1  ;;  %v1184_v5 = vadd.f32 %v1183_v10, %v3538_v36 }
 0x19b   : > { %v1449_v43 = vadd.f32 %v1448_v6, %v1360_v11  ;;  %v1273_v63 = vadd.f32 %v1272_v58, %v1184_v5 }
 0x19d   : > { %2252 = vst [vmem:[%s3562_s19 + $0x240] sm:$0xff] %v1449_v43 }
 0x1a0   : > { %v1361_v17 = vpop.f32.mrf.mxu2  ;;  %v1186_v30 = vpop.f32.mrf.mxu0 }
 0x1a1   : > { %v1362_v53 = vadd.f32 %v1361_v17, %v1273_v63  ;;  %v1450_v19 = vpop.f32.mrf.mxu3  ;;  %v1187_v38 = vadd.f32 %v1186_v30, %v3538_v36  ;;  %v1275_v39 = vpop.f32.mrf.mxu1 }
 0x1a3   : > { %v1451_v31 = vadd.f32 %v1450_v19, %v1362_v53  ;;  %1501 = vmatmul.bf16.gmra.mxu0 %v3490_v32  ;;  %v1276_v18 = vadd.f32 %v1275_v39, %v1187_v38  ;;  %v2659_v38 = vld [vmem:[%s3328_s1 + $0x1d0] sm:$0xf]  ;;  %v2868_v39 = vld [vmem:[%s3328_s1 + $0x1d8] sm:$0xf0] }
 0x1a4   : > { %1590 = vmatmul.bf16.gmra.mxu1 %v3492_v33 }
 0x1a5   : > { %2255 = vst [vmem:[%s3562_s19 + $0x258] sm:$0xff] %v1451_v31  ;;  %1679 = vmatmul.bf16.gmra.mxu2 %v3494_v34  ;;  %v2467_v31 = vld [vmem:[%s3328_s1 + $0x50] sm:$0xf] }
 0x1a6   : > { %1768 = vmatmul.bf16.gmra.mxu3 %v3496_v35 }
 0x1a8   : > { %v1364_v7 = vpop.f32.mrf.mxu2  ;;  %v1188_v6 = vpop.f32.mrf.mxu0 }
 0x1a9   : > { %v1365_v28 = vadd.f32 %v1364_v7, %v1276_v18  ;;  %v1453_v11 = vpop.f32.mrf.mxu3  ;;  %v1277_v10 = vpop.f32.mrf.mxu1  ;;  %v1189_v43 = vadd.f32 %v1188_v6, %v3538_v36  ;;  %v2660_v18 = vor.u32 %v2868_v39, %v2659_v38  ;;  %v2820_v7 = vld [vmem:[%s3328_s1 + $0x58] sm:$0xf0] }
 0x1ab   : > { %v1454_v58 = vadd.f32 %v1453_v11, %v1365_v28  ;;  %v1278_v5 = vadd.f32 %v1277_v10, %v1189_v43  ;;  %v2755_v28 = vld [vmem:[%s3328_s1 + $0x290] sm:$0xf]  ;;  %v2892_v11 = vld [vmem:[%s3328_s1 + $0x298] sm:$0xf0]  ;;  %v2468_v10 = vor.u32 %v2820_v7, %v2467_v31  ;;  %2006 = vmatpush.bf16.msra.mxu2 %v2660_v18 }
 0x1ad   : > { %2258 = vst [vmem:[%s3562_s19 + $0x270] sm:$0xff] %v1454_v58  ;;  %v2756_v58 = vor.u32 %v2892_v11, %v2755_v28  ;;  %1828 = vmatpush.bf16.msra.mxu0 %v2468_v10 }
 0x1af   : > { %2095 = vmatpush.bf16.msra.mxu3 %v2756_v58 }
 0x1b0   : > { %v1366_v41 = vpop.f32.mrf.mxu2  ;;  %v1191_v63 = vpop.f32.mrf.mxu0 }
 0x1b1   : > { %v1367_v62 = vadd.f32 %v1366_v41, %v1278_v5  ;;  %v1455_v61 = vpop.f32.mrf.mxu3  ;;  %v1192_v17 = vadd.f32 %v1191_v63, %v3538_v36  ;;  %v1280_v53 = vpop.f32.mrf.mxu1 }
 0x1b3   : > { %v1456_v19 = vadd.f32 %v1455_v61, %v1367_v62  ;;  %1506 = vmatmul.bf16.gmra.mxu0 %v3502_v44  ;;  %v1281_v30 = vadd.f32 %v1280_v53, %v1192_v17  ;;  %v2563_v17 = vld [vmem:[%s3328_s1 + $0x110] sm:$0xf]  ;;  %v2844_v53 = vld [vmem:[%s3328_s1 + $0x118] sm:$0xf0] }
 0x1b4   : > { %1595 = vmatmul.bf16.gmra.mxu1 %v3504_v45 }
 0x1b5   : > { %2261 = vst [vmem:[%s3562_s19 + $0x288] sm:$0xff] %v1456_v19  ;;  %1684 = vmatmul.bf16.gmra.mxu2 %v3506_v46  ;;  %v2564_v19 = vor.u32 %v2844_v53, %v2563_v17 }
 0x1b6   : > { %1773 = vmatmul.bf16.gmra.mxu3 %v3508_v48 }
 0x1b7   : > { %1917 = vmatpush.bf16.msra.mxu1 %v2564_v19 }
 0x1b8   : > { %v1369_v6 = vpop.f32.mrf.mxu2  ;;  %v1193_v41 = vpop.f32.mrf.mxu0 }
 0x1b9   : > { %v1370_v43 = vadd.f32 %v1369_v6, %v1281_v30  ;;  %v1458_v5 = vpop.f32.mrf.mxu3  ;;  %v1282_v62 = vpop.f32.mrf.mxu1  ;;  %v1194_v63 = vadd.f32 %v1193_v41, %v3538_v36 }
 0x1bb   : > { %v1459_v61 = vadd.f32 %v1458_v5, %v1370_v43  ;;  %v1283_v38 = vadd.f32 %v1282_v62, %v1194_v63  ;;  %v3800_v63 = vld [vmem:[%s3535_s10] sm:$0x7] }
 0x1bc   : > { %v3803_v17 = vperm.slane %v3800_v63, 1 }
 0x1bd   : > { %2264 = vst [vmem:[%s3562_s19 + $0x2a0] sm:$0xff] %v1459_v61 }
 0x1c0   : > { %v1371_v39 = vpop.f32.mrf.mxu2  ;;  %v1196_v30 = vpop.f32.mrf.mxu0 }
 0x1c1   : > { %v1372_v31 = vadd.f32 %v1371_v39, %v1283_v38  ;;  %v1460_v7 = vpop.f32.mrf.mxu3  ;;  %v1197_v28 = vadd.f32 %v1196_v30, %v3538_v36  ;;  %v1285_v18 = vpop.f32.mrf.mxu1 }
 0x1c3   : > { %v1461_v11 = vadd.f32 %v1460_v7, %v1372_v31  ;;  %1511 = vmatmul.bf16.gmra.mxu0 %v3522_v20  ;;  %v1286_v6 = vadd.f32 %v1285_v18, %v1197_v28  ;;  %v2647_v18 = vld [vmem:[%s3328_s1 + $0x1b8] sm:$0xf] }
 0x1c4   : > { %1600 = vmatmul.bf16.gmra.mxu1 %v3524_v21 }
 0x1c5   : > { %2267 = vst [vmem:[%s3562_s19 + $0x2b8] sm:$0xff] %v1461_v11  ;;  %1689 = vmatmul.bf16.gmra.mxu2 %v3526_v22  ;;  %v2865_v11 = vld [vmem:[%s3328_s1 + $0x1c0] sm:$0xf0] }
 0x1c6   : > { %1778 = vmatmul.bf16.gmra.mxu3 %v3528_v23 }
 0x1c8   : > { %v1374_v10 = vpop.f32.mrf.mxu2  ;;  %v1198_v5 = vpop.f32.mrf.mxu0 }
 0x1c9   : > { %v1375_v58 = vadd.f32 %v1374_v10, %v1286_v6  ;;  %v1463_v43 = vpop.f32.mrf.mxu3  ;;  %v1287_v41 = vpop.f32.mrf.mxu1  ;;  %v1199_v61 = vadd.f32 %v1198_v5, %v3538_v36  ;;  %v2455_v6 = vld [vmem:[%s3328_s1 + $0x38] sm:$0xf]  ;;  %v2648_v10 = vor.u32 %v2865_v11, %v2647_v18  ;;  %v2889_v5 = vld [vmem:[%s3328_s1 + $0x280] sm:$0xf0] }
 0x1cb   : > { %v1464_v62 = vadd.f32 %v1463_v43, %v1375_v58  ;;  %v1288_v53 = vadd.f32 %v1287_v41, %v1199_v61  ;;  %v2817_v58 = vld [vmem:[%s3328_s1 + $0x40] sm:$0xf0]  ;;  %v2743_v43 = vld [vmem:[%s3328_s1 + $0x278] sm:$0xf]  ;;  %2007 = vmatpush.bf16.msra.mxu2 %v2648_v10 }
 0x1cc   : > { %v2744_v61 = vor.u32 %v2889_v5, %v2743_v43 }
 0x1cd   : > { %2270 = vst [vmem:[%s3562_s19 + $0x2d0] sm:$0xff] %v1464_v62  ;;  %v2456_v62 = vor.u32 %v2817_v58, %v2455_v6 }
 0x1ce   : > { %2096 = vmatpush.bf16.msra.mxu3 %v2744_v61 }
 0x1cf   : > { %1829 = vmatpush.bf16.msra.mxu0 %v2456_v62 }
 0x1d0   : > { %v1376_v19 = vpop.f32.mrf.mxu2  ;;  %v1477_v31 = vpop.f32.mrf.mxu0 }
 0x1d1   : > { %v1377_v38 = vadd.f32 %v1376_v19, %v1288_v53  ;;  %v1465_v39 = vpop.f32.mrf.mxu3  ;;  %v1478_v7 = vadd.f32 %v1477_v31, %v3803_v17  ;;  %v1566_v36 = vpop.f32.mrf.mxu1 }
 0x1d3   : > { %v1466_v30 = vadd.f32 %v1465_v39, %v1377_v38  ;;  %1516 = vmatmul.bf16.gmra.mxu0 %v3540_v42  ;;  %v1567_v28 = vadd.f32 %v1566_v36, %v1478_v7  ;;  %v2551_v36 = vld [vmem:[%s3328_s1 + $0xf8] sm:$0xf] }
 0x1d4   : > { %1605 = vmatmul.bf16.gmra.mxu1 %v3542_v56 }
 0x1d5   : > { %2273 = vst [vmem:[%s3562_s19 + $0x2e8] sm:$0xff] %v1466_v30  ;;  %1694 = vmatmul.bf16.gmra.mxu2 %v3544_v57  ;;  %v2841_v30 = vld [vmem:[%s3328_s1 + $0x100] sm:$0xf0] }
 0x1d6   : > { %1783 = vmatmul.bf16.gmra.mxu3 %v3547_v60  ;;  %v2552_v18 = vor.u32 %v2841_v30, %v2551_v36 }
 0x1d8   : > { %v1655_v41 = vpop.f32.mrf.mxu2  ;;  %v1479_v38 = vpop.f32.mrf.mxu0  ;;  %1918 = vmatpush.bf16.msra.mxu1 %v2552_v18 }
 0x1d9   : > { %v1656_v53 = vadd.f32 %v1655_v41, %v1567_v28  ;;  %v1744_v19 = vpop.f32.mrf.mxu3  ;;  %v1568_v39 = vpop.f32.mrf.mxu1  ;;  %v1480_v7 = vadd.f32 %v1479_v38, %v3803_v17 }
 0x1db   : > { %v1745_v31 = vadd.f32 %v1744_v19, %v1656_v53  ;;  %v1569_v11 = vadd.f32 %v1568_v39, %v1480_v7 }
 0x1dd   : > { %2181 = vst [vmem:[%s3562_s19 + $0x8] sm:$0xff] %v1745_v31 }
 0x1e0   : > { %v1657_v60 = vpop.f32.mrf.mxu2  ;;  %v1482_v28 = vpop.f32.mrf.mxu0 }
 0x1e1   : > { %v1658_v6 = vadd.f32 %v1657_v60, %v1569_v11  ;;  %v1746_v58 = vpop.f32.mrf.mxu3  ;;  %v1483_v43 = vadd.f32 %v1482_v28, %v3803_v17  ;;  %v1571_v10 = vpop.f32.mrf.mxu1  ;;  %v4173_v28 = vld [vmem:[#allocation14_spill] sm:$0xff] }
 0x1e3   : > { %v1747_v5 = vadd.f32 %v1746_v58, %v1658_v6  ;;  %1521 = vmatmul.bf16.gmra.mxu0 %v3567_v4  ;;  %v1572_v41 = vadd.f32 %v1571_v10, %v1483_v43  ;;  %v4174_v10 = vld [vmem:[#allocation15_spill] sm:$0xff] }
 0x1e4   : > { %1610 = vmatmul.bf16.gmra.mxu1 %v3569_v8 }
 0x1e5   : > { %2184 = vst [vmem:[%s3562_s19 + $0x20] sm:$0xff] %v1747_v5  ;;  %1699 = vmatmul.bf16.gmra.mxu2 %v3571_v9  ;;  %v4175_v5 = vld [vmem:[#allocation16_spill] sm:$0xff] }
 0x1e6   : > { %1788 = vmatmul.bf16.gmra.mxu3 %v3574_v16 }
 0x1e8   : > { %v1660_v62 = vpop.f32.mrf.mxu2  ;;  %v1484_v53 = vpop.f32.mrf.mxu0 }
 0x1e9   : > { %v1661_v61 = vadd.f32 %v1660_v62, %v1572_v41  ;;  %v1749_v60 = vpop.f32.mrf.mxu3  ;;  %v1573_v19 = vpop.f32.mrf.mxu1  ;;  %v1485_v39 = vadd.f32 %v1484_v53, %v3803_v17  ;;  %v4176_v41 = vld [vmem:[#allocation17_spill] sm:$0xff]  ;;  %v2635_v62 = vld [vmem:[%s3328_s1 + $0x1a0] sm:$0xf] }
 0x1eb   : > { %v1750_v38 = vadd.f32 %v1749_v60, %v1661_v61  ;;  %v1574_v31 = vadd.f32 %v1573_v19, %v1485_v39  ;;  %v2862_v61 = vld [vmem:[%s3328_s1 + $0x1a8] sm:$0xf0]  ;;  %v2443_v60 = vld [vmem:[%s3328_s1 + $0x20] sm:$0xf] }
 0x1ec   : > { %v2636_v53 = vor.u32 %v2862_v61, %v2635_v62  ;;  %v2814_v19 = vld [vmem:[%s3328_s1 + $0x28] sm:$0xf0]  ;;  %v2539_v61 = vld [vmem:[%s3328_s1 + $0xe0] sm:$0xf] }
 0x1ed   : > { %2187 = vst [vmem:[%s3562_s19 + $0x38] sm:$0xff] %v1750_v38  ;;  %v2731_v38 = vld [vmem:[%s3328_s1 + $0x260] sm:$0xf]  ;;  %v2886_v39 = vld [vmem:[%s3328_s1 + $0x268] sm:$0xf0] }
 0x1ee   : > { %2008 = vmatpush.bf16.msra.mxu2 %v2636_v53 }
 0x1f0   : > { %v1662_v7 = vpop.f32.mrf.mxu2  ;;  %v1487_v18 = vpop.f32.mrf.mxu0 }
 0x1f1   : > { %v1663_v36 = vadd.f32 %v1662_v7, %v1574_v31  ;;  %v1751_v30 = vpop.f32.mrf.mxu3  ;;  %v1488_v11 = vadd.f32 %v1487_v18, %v3803_v17  ;;  %v1576_v6 = vpop.f32.mrf.mxu1  ;;  %v2444_v7 = vor.u32 %v2814_v19, %v2443_v60 }
 0x1f3   : > { %v1752_v58 = vadd.f32 %v1751_v30, %v1663_v36  ;;  %1526 = vmatmul.bf16.gmra.mxu0 %v4173_v28  ;;  %v1577_v43 = vadd.f32 %v1576_v6, %v1488_v11  ;;  %v2732_v36 = vor.u32 %v2886_v39, %v2731_v38 }
 0x1f4   : > { %1615 = vmatmul.bf16.gmra.mxu1 %v4174_v10  ;;  %1830 = vmatpush.bf16.msra.mxu0 %v2444_v7 }
 0x1f5   : > { %2190 = vst [vmem:[%s3562_s19 + $0x50] sm:$0xff] %v1752_v58  ;;  %1704 = vmatmul.bf16.gmra.mxu2 %v4175_v5  ;;  %2097 = vmatpush.bf16.msra.mxu3 %v2732_v36  ;;  %v4178_v36 = vld [vmem:[#allocation19_spill] sm:$0xff] }
 0x1f6   : > { %1793 = vmatmul.bf16.gmra.mxu3 %v4176_v41  ;;  %v2838_v41 = vld [vmem:[%s3328_s1 + $0xe8] sm:$0xf0] }
 0x1f7   : > { %v2540_v5 = vor.u32 %v2838_v41, %v2539_v61  ;;  %v4180_v41 = vld [vmem:[#allocation21_spill] sm:$0xff] }
 0x1f8   : > { %v1665_v31 = vpop.f32.mrf.mxu2  ;;  %v1489_v11 = vpop.f32.mrf.mxu0 }
 0x1f9   : > { %v1666_v30 = vadd.f32 %v1665_v31, %v1577_v43  ;;  %v1754_v18 = vpop.f32.mrf.mxu3  ;;  %v1578_v6 = vpop.f32.mrf.mxu1  ;;  %v1490_v62 = vadd.f32 %v1489_v11, %v3803_v17  ;;  %1919 = vmatpush.bf16.msra.mxu1 %v2540_v5  ;;  %v4177_v31 = vld [vmem:[#allocation18_spill] sm:$0xff] }
 0x1fb   : > { %v1755_v58 = vadd.f32 %v1754_v18, %v1666_v30  ;;  %v1579_v10 = vadd.f32 %v1578_v6, %v1490_v62  ;;  %v4179_v30 = vld [vmem:[#allocation20_spill] sm:$0xff] }
 0x1fd   : > { %2193 = vst [vmem:[%s3562_s19 + $0x68] sm:$0xff] %v1755_v58 }
 0x200   : > { %v1667_v28 = vpop.f32.mrf.mxu2  ;;  %v1492_v43 = vpop.f32.mrf.mxu0 }
 0x201   : > { %v1668_v60 = vadd.f32 %v1667_v28, %v1579_v10  ;;  %v1756_v19 = vpop.f32.mrf.mxu3  ;;  %v1493_v38 = vadd.f32 %v1492_v43, %v3803_v17  ;;  %v1581_v53 = vpop.f32.mrf.mxu1 }
 0x203   : > { %v1757_v39 = vadd.f32 %v1756_v19, %v1668_v60  ;;  %1531 = vmatmul.bf16.gmra.mxu0 %v4177_v31  ;;  %v1582_v7 = vadd.f32 %v1581_v53, %v1493_v38 }
 0x204   : > { %1620 = vmatmul.bf16.gmra.mxu1 %v4178_v36 }
 0x205   : > { %2196 = vst [vmem:[%s3562_s19 + $0x80] sm:$0xff] %v1757_v39  ;;  %1709 = vmatmul.bf16.gmra.mxu2 %v4179_v30 }
 0x206   : > { %1798 = vmatmul.bf16.gmra.mxu3 %v4180_v41  ;;  %v2835_v41 = vld [vmem:[%s3328_s1 + $0xd0] sm:$0xf0] }
 0x208   : > { %v1670_v18 = vpop.f32.mrf.mxu2  ;;  %v1494_v10 = vpop.f32.mrf.mxu0 }
 0x209   : > { %v1671_v5 = vadd.f32 %v1670_v18, %v1582_v7  ;;  %v1759_v28 = vpop.f32.mrf.mxu3  ;;  %v1583_v11 = vpop.f32.mrf.mxu1  ;;  %v1495_v58 = vadd.f32 %v1494_v10, %v3803_v17  ;;  %v4181_v7 = vld [vmem:[#allocation22_spill] sm:$0xff]  ;;  %v4184_v10 = vld [vmem:[#allocation25_spill] sm:$0xff] }
 0x20b   : > { %v1760_v6 = vadd.f32 %v1759_v28, %v1671_v5  ;;  %v1584_v62 = vadd.f32 %v1583_v11, %v1495_v58  ;;  %v4182_v5 = vld [vmem:[#allocation23_spill] sm:$0xff]  ;;  %v4183_v28 = vld [vmem:[#allocation24_spill] sm:$0xff] }
 0x20c   : > { %v2623_v11 = vld [vmem:[%s3328_s1 + $0x188] sm:$0xf] }
 0x20d   : > { %2199 = vst [vmem:[%s3562_s19 + $0x98] sm:$0xff] %v1760_v6  ;;  %v2859_v6 = vld [vmem:[%s3328_s1 + $0x190] sm:$0xf0]  ;;  %v2431_v58 = vld [vmem:[%s3328_s1 + $0x8] sm:$0xf] }
 0x210   : > { %v1672_v61 = vpop.f32.mrf.mxu2  ;;  %v1497_v43 = vpop.f32.mrf.mxu0 }
 0x211   : > { %v1673_v60 = vadd.f32 %v1672_v61, %v1584_v62  ;;  %v1761_v19 = vpop.f32.mrf.mxu3  ;;  %v1498_v38 = vadd.f32 %v1497_v43, %v3803_v17  ;;  %v1586_v53 = vpop.f32.mrf.mxu1  ;;  %v2624_v62 = vor.u32 %v2859_v6, %v2623_v11  ;;  %v2811_v61 = vld [vmem:[%s3328_s1 + $0x10] sm:$0xf0]  ;;  %v2719_v43 = vld [vmem:[%s3328_s1 + $0x248] sm:$0xf] }
 0x212   : > { %v2527_v6 = vld [vmem:[%s3328_s1 + $0xc8] sm:$0xf] }
 0x213   : > { %v1762_v39 = vadd.f32 %v1761_v19, %v1673_v60  ;;  %1536 = vmatmul.bf16.gmra.mxu0 %v4181_v7  ;;  %v1587_v18 = vadd.f32 %v1586_v53, %v1498_v38  ;;  %v2883_v60 = vld [vmem:[%s3328_s1 + $0x250] sm:$0xf0]  ;;  %v2432_v7 = vor.u32 %v2811_v61, %v2431_v58  ;;  %2009 = vmatpush.bf16.msra.mxu2 %v2624_v62 }
 0x214   : > { %1625 = vmatmul.bf16.gmra.mxu1 %v4182_v5  ;;  %v2528_v30 = vor.u32 %v2835_v41, %v2527_v6  ;;  %v4188_v41 = vld [vmem:[#allocation29_spill] sm:$0xff] }
 0x215   : > { %2202 = vst [vmem:[%s3562_s19 + $0xb0] sm:$0xff] %v1762_v39  ;;  %1714 = vmatmul.bf16.gmra.mxu2 %v4183_v28  ;;  %v2720_v39 = vor.u32 %v2883_v60, %v2719_v43  ;;  %1831 = vmatpush.bf16.msra.mxu0 %v2432_v7  ;;  %v4185_v60 = vld [vmem:[#allocation26_spill] sm:$0xff] }
 0x216   : > { %1803 = vmatmul.bf16.gmra.mxu3 %v4184_v10  ;;  %1920 = vmatpush.bf16.msra.mxu1 %v2528_v30 }
 0x217   : > { %2098 = vmatpush.bf16.msra.mxu3 %v2720_v39 }
 0x218   : > { %v1675_v19 = vpop.f32.mrf.mxu2  ;;  %v1499_v5 = vpop.f32.mrf.mxu0 }
 0x219   : > { %v1676_v38 = vadd.f32 %v1675_v19, %v1587_v18  ;;  %v1764_v53 = vpop.f32.mrf.mxu3  ;;  %v1588_v28 = vpop.f32.mrf.mxu1  ;;  %v1500_v11 = vadd.f32 %v1499_v5, %v3803_v17  ;;  %v4186_v5 = vld [vmem:[#allocation27_spill] sm:$0xff] }
 0x21b   : > { %v1765_v10 = vadd.f32 %v1764_v53, %v1676_v38  ;;  %v1589_v36 = vadd.f32 %v1588_v28, %v1500_v11 }
 0x21d   : > { %2205 = vst [vmem:[%s3562_s19 + $0xc8] sm:$0xff] %v1765_v10  ;;  %v4187_v10 = vld [vmem:[#allocation28_spill] sm:$0xff] }
 0x220   : > { %v1677_v31 = vpop.f32.mrf.mxu2  ;;  %v1502_v18 = vpop.f32.mrf.mxu0 }
 0x221   : > { %v1678_v58 = vadd.f32 %v1677_v31, %v1589_v36  ;;  %v1766_v61 = vpop.f32.mrf.mxu3  ;;  %v1503_v43 = vadd.f32 %v1502_v18, %v3803_v17  ;;  %v1591_v62 = vpop.f32.mrf.mxu1 }
 0x223   : > { %v1767_v7 = vadd.f32 %v1766_v61, %v1678_v58  ;;  %1541 = vmatmul.bf16.gmra.mxu0 %v4185_v60  ;;  %v1592_v19 = vadd.f32 %v1591_v62, %v1503_v43 }
 0x224   : > { %1630 = vmatmul.bf16.gmra.mxu1 %v4186_v5 }
 0x225   : > { %2208 = vst [vmem:[%s3562_s19 + $0xe0] sm:$0xff] %v1767_v7  ;;  %1719 = vmatmul.bf16.gmra.mxu2 %v4187_v10 }
 0x226   : > { %1808 = vmatmul.bf16.gmra.mxu3 %v4188_v41  ;;  %v4189_v41 = vld [vmem:[#allocation30_spill] sm:$0xff] }
 0x228   : > { %v1680_v28 = vpop.f32.mrf.mxu2  ;;  %v1504_v36 = vpop.f32.mrf.mxu0 }
 0x229   : > { %v1681_v30 = vadd.f32 %v1680_v28, %v1592_v19  ;;  %v1769_v31 = vpop.f32.mrf.mxu3  ;;  %v1593_v39 = vpop.f32.mrf.mxu1  ;;  %v1505_v53 = vadd.f32 %v1504_v36, %v3803_v17  ;;  %v4190_v28 = vld [vmem:[#allocation31_spill] sm:$0xff] }
 0x22b   : > { %v1770_v38 = vadd.f32 %v1769_v31, %v1681_v30  ;;  %v1594_v11 = vadd.f32 %v1593_v39, %v1505_v53  ;;  %v4191_v30 = vld [vmem:[#allocation32_spill] sm:$0xff]  ;;  %v4192_v31 = vld [vmem:[#allocation33_spill] sm:$0xff] }
 0x22d   : > { %2211 = vst [vmem:[%s3562_s19 + $0xf8] sm:$0xff] %v1770_v38 }
 0x230   : > { %v1682_v6 = vpop.f32.mrf.mxu2  ;;  %v1507_v18 = vpop.f32.mrf.mxu0 }
 0x231   : > { %v1683_v58 = vadd.f32 %v1682_v6, %v1594_v11  ;;  %v1771_v61 = vpop.f32.mrf.mxu3  ;;  %v1508_v43 = vadd.f32 %v1507_v18, %v3803_v17  ;;  %v1596_v62 = vpop.f32.mrf.mxu1 }
 0x233   : > { %v1772_v7 = vadd.f32 %v1771_v61, %v1683_v58  ;;  %1546 = vmatmul.bf16.gmra.mxu0 %v4189_v41  ;;  %v1597_v19 = vadd.f32 %v1596_v62, %v1508_v43 }
 0x234   : > { %1635 = vmatmul.bf16.gmra.mxu1 %v4190_v28 }
 0x235   : > { %2214 = vst [vmem:[%s3562_s19 + $0x110] sm:$0xff] %v1772_v7  ;;  %1724 = vmatmul.bf16.gmra.mxu2 %v4191_v30 }
 0x236   : > { %1813 = vmatmul.bf16.gmra.mxu3 %v4192_v31 }
 0x238   : > { %v1685_v36 = vpop.f32.mrf.mxu2  ;;  %v1509_v53 = vpop.f32.mrf.mxu0 }
 0x239   : > { %v1686_v39 = vadd.f32 %v1685_v36, %v1597_v19  ;;  %v1774_v38 = vpop.f32.mrf.mxu3  ;;  %v1598_v11 = vpop.f32.mrf.mxu1  ;;  %v1510_v18 = vadd.f32 %v1509_v53, %v3803_v17 }
 0x23b   : > { %v1775_v6 = vadd.f32 %v1774_v38, %v1686_v39  ;;  %v1599_v58 = vadd.f32 %v1598_v11, %v1510_v18 }
 0x23d   : > { %2217 = vst [vmem:[%s3562_s19 + $0x128] sm:$0xff] %v1775_v6 }
 0x240   : > { %v1687_v61 = vpop.f32.mrf.mxu2  ;;  %v1512_v62 = vpop.f32.mrf.mxu0 }
 0x241   : > { %v1688_v7 = vadd.f32 %v1687_v61, %v1599_v58  ;;  %v1776_v43 = vpop.f32.mrf.mxu3  ;;  %v1513_v28 = vadd.f32 %v1512_v62, %v3803_v17  ;;  %v1601_v30 = vpop.f32.mrf.mxu1 }
 0x243   : > { %v1777_v31 = vadd.f32 %v1776_v43, %v1688_v7  ;;  %1551 = vmatmul.bf16.gmra.mxu0 %v3687_v37  ;;  %v1602_v19 = vadd.f32 %v1601_v30, %v1513_v28 }
 0x244   : > { %1640 = vmatmul.bf16.gmra.mxu1 %v3689_v40 }
 0x245   : > { %2220 = vst [vmem:[%s3562_s19 + $0x140] sm:$0xff] %v1777_v31  ;;  %1729 = vmatmul.bf16.gmra.mxu2 %v3691_v59 }
 0x246   : > { %1818 = vmatmul.bf16.gmra.mxu3 %v3694_v29 }
 0x248   : > { %v1690_v36 = vpop.f32.mrf.mxu2  ;;  %v1514_v53 = vpop.f32.mrf.mxu0 }
 0x249   : > { %v1691_v39 = vadd.f32 %v1690_v36, %v1602_v19  ;;  %v1779_v38 = vpop.f32.mrf.mxu3  ;;  %v1603_v11 = vpop.f32.mrf.mxu1  ;;  %v1515_v18 = vadd.f32 %v1514_v53, %v3803_v17  ;;  %v4193_v36 = vld [vmem:[#allocation12_spill] sm:$0xff] }
 0x24b   : > { %v1780_v6 = vadd.f32 %v1779_v38, %v1691_v39  ;;  %v1604_v58 = vadd.f32 %v1603_v11, %v1515_v18 }
 0x24d   : > { %2223 = vst [vmem:[%s3562_s19 + $0x158] sm:$0xff] %v1780_v6 }
 0x250   : > { %v1692_v61 = vpop.f32.mrf.mxu2  ;;  %v1517_v30 = vpop.f32.mrf.mxu0 }
 0x251   : > { %v1693_v31 = vadd.f32 %v1692_v61, %v1604_v58  ;;  %v1781_v28 = vpop.f32.mrf.mxu3  ;;  %v1518_v7 = vadd.f32 %v1517_v30, %v3803_v17  ;;  %v1606_v43 = vpop.f32.mrf.mxu1 }
 0x253   : > { %v1782_v62 = vadd.f32 %v1781_v28, %v1693_v31  ;;  %1832 = vmatmul.bf16.vlgmr.msra.gmra.mxu0 %v3404_v47  ;;  %v1607_v19 = vadd.f32 %v1606_v43, %v1518_v7 }
 0x254   : > { %1921 = vmatmul.bf16.vlgmr.msra.gmra.mxu1 %v3408_v51 }
 0x255   : > { %2226 = vst [vmem:[%s3562_s19 + $0x170] sm:$0xff] %v1782_v62  ;;  %2010 = vmatmul.bf16.vlgmr.msra.gmra.mxu2 %v3410_v52 }
 0x256   : > { %2099 = vmatmul.bf16.vlgmr.msra.gmra.mxu3 %v4193_v36 }
 0x258   : > { %v1695_v39 = vpop.f32.mrf.mxu2  ;;  %v1519_v11 = vpop.f32.mrf.mxu0 }
 0x259   : > { %v1696_v38 = vadd.f32 %v1695_v39, %v1607_v19  ;;  %v1784_v53 = vpop.f32.mrf.mxu3  ;;  %v1608_v6 = vpop.f32.mrf.mxu1  ;;  %v1520_v58 = vadd.f32 %v1519_v11, %v3803_v17 }
 0x25b   : > { %v1785_v18 = vadd.f32 %v1784_v53, %v1696_v38  ;;  %v1609_v61 = vadd.f32 %v1608_v6, %v1520_v58 }
 0x25d   : > { %2229 = vst [vmem:[%s3562_s19 + $0x188] sm:$0xff] %v1785_v18 }
 0x260   : > { %v1697_v47 = vpop.f32.mrf.mxu2  ;;  %v1522_v30 = vpop.f32.mrf.mxu0 }
 0x261   : > { %v1698_v31 = vadd.f32 %v1697_v47, %v1609_v61  ;;  %v1786_v28 = vpop.f32.mrf.mxu3  ;;  %v1523_v51 = vadd.f32 %v1522_v30, %v3803_v17  ;;  %v1611_v52 = vpop.f32.mrf.mxu1 }
 0x263   : > { %v1787_v7 = vadd.f32 %v1786_v28, %v1698_v31  ;;  %1837 = vmatmul.bf16.gmra.mxu0 %v3426_v12  ;;  %v1612_v43 = vadd.f32 %v1611_v52, %v1523_v51 }
 0x264   : > { %1926 = vmatmul.bf16.gmra.mxu1 %v3428_v13 }
 0x265   : > { %2232 = vst [vmem:[%s3562_s19 + $0x1a0] sm:$0xff] %v1787_v7  ;;  %2015 = vmatmul.bf16.gmra.mxu2 %v3430_v14 }
 0x266   : > { %2104 = vmatmul.bf16.gmra.mxu3 %v3432_v15 }
 0x268   : > { %v1700_v62 = vpop.f32.mrf.mxu2  ;;  %v1524_v39 = vpop.f32.mrf.mxu0 }
 0x269   : > { %v1701_v19 = vadd.f32 %v1700_v62, %v1612_v43  ;;  %v1789_v36 = vpop.f32.mrf.mxu3  ;;  %v1613_v38 = vpop.f32.mrf.mxu1  ;;  %v1525_v11 = vadd.f32 %v1524_v39, %v3803_v17 }
 0x26b   : > { %v1790_v53 = vadd.f32 %v1789_v36, %v1701_v19  ;;  %v1614_v6 = vadd.f32 %v1613_v38, %v1525_v11 }
 0x26d   : > { %2235 = vst [vmem:[%s3562_s19 + $0x1b8] sm:$0xff] %v1790_v53 }
 0x270   : > { %v1702_v12 = vpop.f32.mrf.mxu2  ;;  %v1527_v61 = vpop.f32.mrf.mxu0 }
 0x271   : > { %v1703_v18 = vadd.f32 %v1702_v12, %v1614_v6  ;;  %v1791_v58 = vpop.f32.mrf.mxu3  ;;  %v1528_v13 = vadd.f32 %v1527_v61, %v3803_v17  ;;  %v1616_v14 = vpop.f32.mrf.mxu1 }
 0x273   : > { %v1792_v15 = vadd.f32 %v1791_v58, %v1703_v18  ;;  %1842 = vmatmul.bf16.gmra.mxu0 %v3438_v24  ;;  %v1617_v47 = vadd.f32 %v1616_v14, %v1528_v13 }
 0x274   : > { %1931 = vmatmul.bf16.gmra.mxu1 %v3440_v25 }
 0x275   : > { %2238 = vst [vmem:[%s3562_s19 + $0x1d0] sm:$0xff] %v1792_v15  ;;  %2020 = vmatmul.bf16.gmra.mxu2 %v3442_v26 }
 0x276   : > { %2109 = vmatmul.bf16.gmra.mxu3 %v3444_v27 }
 0x278   : > { %v1705_v31 = vpop.f32.mrf.mxu2  ;;  %v1529_v51 = vpop.f32.mrf.mxu0 }
 0x279   : > { %v1706_v28 = vadd.f32 %v1705_v31, %v1617_v47  ;;  %v1794_v30 = vpop.f32.mrf.mxu3  ;;  %v1618_v52 = vpop.f32.mrf.mxu1  ;;  %v1530_v43 = vadd.f32 %v1529_v51, %v3803_v17 }
 0x27b   : > { %v1795_v7 = vadd.f32 %v1794_v30, %v1706_v28  ;;  %v1619_v62 = vadd.f32 %v1618_v52, %v1530_v43 }
 0x27d   : > { %2241 = vst [vmem:[%s3562_s19 + $0x1e8] sm:$0xff] %v1795_v7 }
 0x280   : > { %v1707_v24 = vpop.f32.mrf.mxu2  ;;  %v1532_v39 = vpop.f32.mrf.mxu0 }
 0x281   : > { %v1708_v19 = vadd.f32 %v1707_v24, %v1619_v62  ;;  %v1796_v36 = vpop.f32.mrf.mxu3  ;;  %v1533_v25 = vadd.f32 %v1532_v39, %v3803_v17  ;;  %v1621_v26 = vpop.f32.mrf.mxu1 }
 0x283   : > { %v1797_v27 = vadd.f32 %v1796_v36, %v1708_v19  ;;  %1847 = vmatmul.bf16.gmra.mxu0 %v3458_v49  ;;  %v1622_v38 = vadd.f32 %v1621_v26, %v1533_v25 }
 0x284   : > { %1936 = vmatmul.bf16.gmra.mxu1 %v3460_v50 }
 0x285   : > { %2244 = vst [vmem:[%s3562_s19 + $0x200] sm:$0xff] %v1797_v27  ;;  %2025 = vmatmul.bf16.gmra.mxu2 %v3462_v54 }
 0x286   : > { %2114 = vmatmul.bf16.gmra.mxu3 %v3464_v55 }
 0x288   : > { %v1710_v53 = vpop.f32.mrf.mxu2  ;;  %v1534_v12 = vpop.f32.mrf.mxu0 }
 0x289   : > { %v1711_v11 = vadd.f32 %v1710_v53, %v1622_v38  ;;  %v1799_v6 = vpop.f32.mrf.mxu3  ;;  %v1623_v18 = vpop.f32.mrf.mxu1  ;;  %v1535_v61 = vadd.f32 %v1534_v12, %v3803_v17 }
 0x28b   : > { %v1800_v58 = vadd.f32 %v1799_v6, %v1711_v11  ;;  %v1624_v13 = vadd.f32 %v1623_v18, %v1535_v61 }
 0x28d   : > { %2247 = vst [vmem:[%s3562_s19 + $0x218] sm:$0xff] %v1800_v58 }
 0x290   : > { %v1712_v49 = vpop.f32.mrf.mxu2  ;;  %v1537_v47 = vpop.f32.mrf.mxu0 }
 0x291   : > { %v1713_v14 = vadd.f32 %v1712_v49, %v1624_v13  ;;  %v1801_v15 = vpop.f32.mrf.mxu3  ;;  %v1538_v50 = vadd.f32 %v1537_v47, %v3803_v17  ;;  %v1626_v54 = vpop.f32.mrf.mxu1 }
 0x293   : > { %v1802_v55 = vadd.f32 %v1801_v15, %v1713_v14  ;;  %1852 = vmatmul.bf16.gmra.mxu0 %v3470_v0  ;;  %v1627_v31 = vadd.f32 %v1626_v54, %v1538_v50 }
 0x294   : > { %1941 = vmatmul.bf16.gmra.mxu1 %v3472_v1 }
 0x295   : > { %2250 = vst [vmem:[%s3562_s19 + $0x230] sm:$0xff] %v1802_v55  ;;  %2030 = vmatmul.bf16.gmra.mxu2 %v3474_v2 }
 0x296   : > { %2119 = vmatmul.bf16.gmra.mxu3 %v3476_v3 }
 0x298   : > { %v1715_v28 = vpop.f32.mrf.mxu2  ;;  %v1539_v52 = vpop.f32.mrf.mxu0 }
 0x299   : > { %v1716_v30 = vadd.f32 %v1715_v28, %v1627_v31  ;;  %v1804_v51 = vpop.f32.mrf.mxu3  ;;  %v1628_v7 = vpop.f32.mrf.mxu1  ;;  %v1540_v62 = vadd.f32 %v1539_v52, %v3803_v17 }
 0x29b   : > { %v1805_v43 = vadd.f32 %v1804_v51, %v1716_v30  ;;  %v1629_v24 = vadd.f32 %v1628_v7, %v1540_v62 }
 0x29d   : > { %2253 = vst [vmem:[%s3562_s19 + $0x248] sm:$0xff] %v1805_v43 }
 0x2a0   : > { %v1717_v0 = vpop.f32.mrf.mxu2  ;;  %v1542_v39 = vpop.f32.mrf.mxu0 }
 0x2a1   : > { %v1718_v19 = vadd.f32 %v1717_v0, %v1629_v24  ;;  %v1806_v36 = vpop.f32.mrf.mxu3  ;;  %v1543_v1 = vadd.f32 %v1542_v39, %v3803_v17  ;;  %v1631_v2 = vpop.f32.mrf.mxu1 }
 0x2a3   : > { %v1807_v3 = vadd.f32 %v1806_v36, %v1718_v19  ;;  %1857 = vmatmul.bf16.gmra.mxu0 %v3490_v32  ;;  %v1632_v25 = vadd.f32 %v1631_v2, %v1543_v1 }
 0x2a4   : > { %1946 = vmatmul.bf16.gmra.mxu1 %v3492_v33 }
 0x2a5   : > { %2256 = vst [vmem:[%s3562_s19 + $0x260] sm:$0xff] %v1807_v3  ;;  %2035 = vmatmul.bf16.gmra.mxu2 %v3494_v34 }
 0x2a6   : > { %2124 = vmatmul.bf16.gmra.mxu3 %v3496_v35 }
 0x2a8   : > { %v1720_v26 = vpop.f32.mrf.mxu2  ;;  %v1544_v53 = vpop.f32.mrf.mxu0 }
 0x2a9   : > { %v1721_v27 = vadd.f32 %v1720_v26, %v1632_v25  ;;  %v1809_v38 = vpop.f32.mrf.mxu3  ;;  %v1633_v11 = vpop.f32.mrf.mxu1  ;;  %v1545_v12 = vadd.f32 %v1544_v53, %v3803_v17 }
 0x2ab   : > { %v1810_v6 = vadd.f32 %v1809_v38, %v1721_v27  ;;  %v1634_v18 = vadd.f32 %v1633_v11, %v1545_v12 }
 0x2ad   : > { %2259 = vst [vmem:[%s3562_s19 + $0x278] sm:$0xff] %v1810_v6 }
 0x2b0   : > { %v1722_v32 = vpop.f32.mrf.mxu2  ;;  %v1547_v13 = vpop.f32.mrf.mxu0 }
 0x2b1   : > { %v1723_v58 = vadd.f32 %v1722_v32, %v1634_v18  ;;  %v1811_v61 = vpop.f32.mrf.mxu3  ;;  %v1548_v33 = vadd.f32 %v1547_v13, %v3803_v17  ;;  %v1636_v34 = vpop.f32.mrf.mxu1 }
 0x2b3   : > { %v1812_v35 = vadd.f32 %v1811_v61, %v1723_v58  ;;  %1862 = vmatmul.bf16.gmra.mxu0 %v3502_v44  ;;  %v1637_v49 = vadd.f32 %v1636_v34, %v1548_v33 }
 0x2b4   : > { %1951 = vmatmul.bf16.gmra.mxu1 %v3504_v45 }
 0x2b5   : > { %2262 = vst [vmem:[%s3562_s19 + $0x290] sm:$0xff] %v1812_v35  ;;  %2040 = vmatmul.bf16.gmra.mxu2 %v3506_v46 }
 0x2b6   : > { %2129 = vmatmul.bf16.gmra.mxu3 %v3508_v48 }
 0x2b8   : > { %v1725_v14 = vpop.f32.mrf.mxu2  ;;  %v1549_v50 = vpop.f32.mrf.mxu0 }
 0x2b9   : > { %v1726_v15 = vadd.f32 %v1725_v14, %v1637_v49  ;;  %v1814_v47 = vpop.f32.mrf.mxu3  ;;  %v1638_v54 = vpop.f32.mrf.mxu1  ;;  %v1550_v31 = vadd.f32 %v1549_v50, %v3803_v17 }
 0x2bb   : > { %v1815_v55 = vadd.f32 %v1814_v47, %v1726_v15  ;;  %v1639_v28 = vadd.f32 %v1638_v54, %v1550_v31 }
 0x2bd   : > { %2265 = vst [vmem:[%s3562_s19 + $0x2a8] sm:$0xff] %v1815_v55 }
 0x2c0   : > { %v1727_v44 = vpop.f32.mrf.mxu2  ;;  %v1552_v52 = vpop.f32.mrf.mxu0 }
 0x2c1   : > { %v1728_v30 = vadd.f32 %v1727_v44, %v1639_v28  ;;  %v1816_v51 = vpop.f32.mrf.mxu3  ;;  %v1553_v45 = vadd.f32 %v1552_v52, %v3803_v17  ;;  %v1641_v46 = vpop.f32.mrf.mxu1  ;;  %v4196_v52 = vld [vmem:[#allocation15_spill] sm:$0xff] }
 0x2c3   : > { %v1817_v48 = vadd.f32 %v1816_v51, %v1728_v30  ;;  %1867 = vmatmul.bf16.gmra.mxu0 %v3522_v20  ;;  %v1642_v7 = vadd.f32 %v1641_v46, %v1553_v45  ;;  %v3958_v20 = vperm.slane %v3800_v63, 2  ;;  %v4194_v63 = vld [vmem:[#allocation13_spill] sm:$0xff]  ;;  %v4195_v30 = vld [vmem:[#allocation14_spill] sm:$0xff]  ;;  %v4197_v45 = vld [vmem:[#allocation16_spill] sm:$0xff] }
 0x2c4   : > { %1956 = vmatmul.bf16.gmra.mxu1 %v3524_v21  ;;  %v4198_v46 = vld [vmem:[#allocation17_spill] sm:$0xff] }
 0x2c5   : > { %2268 = vst [vmem:[%s3562_s19 + $0x2c0] sm:$0xff] %v1817_v48  ;;  %2045 = vmatmul.bf16.gmra.mxu2 %v3526_v22 }
 0x2c6   : > { %2134 = vmatmul.bf16.gmra.mxu3 %v3528_v23 }
 0x2c8   : > { %v1730_v43 = vpop.f32.mrf.mxu2  ;;  %v1554_v0 = vpop.f32.mrf.mxu0 }
 0x2c9   : > { %v1731_v62 = vadd.f32 %v1730_v43, %v1642_v7  ;;  %v1819_v24 = vpop.f32.mrf.mxu3  ;;  %v1643_v19 = vpop.f32.mrf.mxu1  ;;  %v1555_v39 = vadd.f32 %v1554_v0, %v3803_v17 }
 0x2cb   : > { %v1820_v36 = vadd.f32 %v1819_v24, %v1731_v62  ;;  %v1644_v1 = vadd.f32 %v1643_v19, %v1555_v39 }
 0x2cd   : > { %2271 = vst [vmem:[%s3562_s19 + $0x2d8] sm:$0xff] %v1820_v36 }
 0x2d0   : > { %v1732_v2 = vpop.f32.mrf.mxu2  ;;  %v1833_v22 = vpop.f32.mrf.mxu0 }
 0x2d1   : > { %v1733_v21 = vadd.f32 %v1732_v2, %v1644_v1  ;;  %v1821_v3 = vpop.f32.mrf.mxu3  ;;  %v1834_v23 = vadd.f32 %v1833_v22, %v3958_v20  ;;  %v1922_v25 = vpop.f32.mrf.mxu1 }
 0x2d3   : > { %v1822_v26 = vadd.f32 %v1821_v3, %v1733_v21  ;;  %1872 = vmatmul.bf16.gmra.mxu0 %v3540_v42  ;;  %v1923_v27 = vadd.f32 %v1922_v25, %v1834_v23  ;;  %v4199_v25 = vld [vmem:[#allocation18_spill] sm:$0xff] }
 0x2d4   : > { %1961 = vmatmul.bf16.gmra.mxu1 %v3542_v56 }
 0x2d5   : > { %2274 = vst [vmem:[%s3562_s19 + $0x2f0] sm:$0xff] %v1822_v26  ;;  %2050 = vmatmul.bf16.gmra.mxu2 %v3544_v57 }
 0x2d6   : > { %2139 = vmatmul.bf16.gmra.mxu3 %v4194_v63  ;;  %v4201_v63 = vld [vmem:[#allocation20_spill] sm:$0xff] }
 0x2d8   : > { %v2011_v17 = vpop.f32.mrf.mxu2  ;;  %v1835_v11 = vpop.f32.mrf.mxu0 }
 0x2d9   : > { %v2012_v38 = vadd.f32 %v2011_v17, %v1923_v27  ;;  %v2100_v53 = vpop.f32.mrf.mxu3  ;;  %v1924_v6 = vpop.f32.mrf.mxu1  ;;  %v1836_v18 = vadd.f32 %v1835_v11, %v3958_v20  ;;  %v4200_v27 = vld [vmem:[#allocation19_spill] sm:$0xff]  ;;  %v4202_v17 = vld [vmem:[#allocation21_spill] sm:$0xff] }
 0x2db   : > { %v2101_v12 = vadd.f32 %v2100_v53, %v2012_v38  ;;  %v1925_v32 = vadd.f32 %v1924_v6, %v1836_v18 }
 0x2dd   : > { %2182 = vst [vmem:[%s3562_s19 + $0x10] sm:$0xff] %v2101_v12 }
 0x2e0   : > { %v2013_v42 = vpop.f32.mrf.mxu2  ;;  %v1838_v13 = vpop.f32.mrf.mxu0 }
 0x2e1   : > { %v2014_v58 = vadd.f32 %v2013_v42, %v1925_v32  ;;  %v2102_v61 = vpop.f32.mrf.mxu3  ;;  %v1839_v56 = vadd.f32 %v1838_v13, %v3958_v20  ;;  %v1927_v57 = vpop.f32.mrf.mxu1 }
 0x2e3   : > { %v2103_v33 = vadd.f32 %v2102_v61, %v2014_v58  ;;  %1877 = vmatmul.bf16.gmra.mxu0 %v3567_v4  ;;  %v1928_v34 = vadd.f32 %v1927_v57, %v1839_v56 }
 0x2e4   : > { %1966 = vmatmul.bf16.gmra.mxu1 %v3569_v8 }
 0x2e5   : > { %2185 = vst [vmem:[%s3562_s19 + $0x28] sm:$0xff] %v2103_v33  ;;  %2055 = vmatmul.bf16.gmra.mxu2 %v3571_v9 }
 0x2e6   : > { %2144 = vmatmul.bf16.gmra.mxu3 %v3574_v16 }
 0x2e8   : > { %v2016_v35 = vpop.f32.mrf.mxu2  ;;  %v1840_v15 = vpop.f32.mrf.mxu0 }
 0x2e9   : > { %v2017_v49 = vadd.f32 %v2016_v35, %v1928_v34  ;;  %v2105_v14 = vpop.f32.mrf.mxu3  ;;  %v1929_v47 = vpop.f32.mrf.mxu1  ;;  %v1841_v54 = vadd.f32 %v1840_v15, %v3958_v20  ;;  %v4203_v35 = vld [vmem:[#allocation22_spill] sm:$0xff]  ;;  %v4205_v15 = vld [vmem:[#allocation24_spill] sm:$0xff] }
 0x2eb   : > { %v2106_v50 = vadd.f32 %v2105_v14, %v2017_v49  ;;  %v1930_v55 = vadd.f32 %v1929_v47, %v1841_v54  ;;  %v4204_v14 = vld [vmem:[#allocation23_spill] sm:$0xff]  ;;  %v4206_v47 = vld [vmem:[#allocation25_spill] sm:$0xff] }
 0x2ed   : > { %2188 = vst [vmem:[%s3562_s19 + $0x40] sm:$0xff] %v2106_v50 }
 0x2f0   : > { %v2018_v4 = vpop.f32.mrf.mxu2  ;;  %v1843_v44 = vpop.f32.mrf.mxu0 }
 0x2f1   : > { %v2019_v31 = vadd.f32 %v2018_v4, %v1930_v55  ;;  %v2107_v28 = vpop.f32.mrf.mxu3  ;;  %v1844_v8 = vadd.f32 %v1843_v44, %v3958_v20  ;;  %v1932_v9 = vpop.f32.mrf.mxu1 }
 0x2f3   : > { %v2108_v16 = vadd.f32 %v2107_v28, %v2019_v31  ;;  %1882 = vmatmul.bf16.gmra.mxu0 %v4195_v30  ;;  %v1933_v51 = vadd.f32 %v1932_v9, %v1844_v8 }
 0x2f4   : > { %1971 = vmatmul.bf16.gmra.mxu1 %v4196_v52 }
 0x2f5   : > { %2191 = vst [vmem:[%s3562_s19 + $0x58] sm:$0xff] %v2108_v16  ;;  %2060 = vmatmul.bf16.gmra.mxu2 %v4197_v45 }
 0x2f6   : > { %2149 = vmatmul.bf16.gmra.mxu3 %v4198_v46 }
 0x2f8   : > { %v2021_v48 = vpop.f32.mrf.mxu2  ;;  %v1845_v62 = vpop.f32.mrf.mxu0 }
 0x2f9   : > { %v2022_v7 = vadd.f32 %v2021_v48, %v1933_v51  ;;  %v2110_v43 = vpop.f32.mrf.mxu3  ;;  %v1934_v24 = vpop.f32.mrf.mxu1  ;;  %v1846_v19 = vadd.f32 %v1845_v62, %v3958_v20 }
 0x2fb   : > { %v2111_v0 = vadd.f32 %v2110_v43, %v2022_v7  ;;  %v1935_v36 = vadd.f32 %v1934_v24, %v1846_v19  ;;  %v4207_v7 = vld [vmem:[#allocation29_spill] sm:$0xff] }
 0x2fd   : > { %2194 = vst [vmem:[%s3562_s19 + $0x70] sm:$0xff] %v2111_v0 }
 0x300   : > { %v2023_v39 = vpop.f32.mrf.mxu2  ;;  %v1848_v21 = vpop.f32.mrf.mxu0 }
 0x301   : > { %v2024_v1 = vadd.f32 %v2023_v39, %v1935_v36  ;;  %v2112_v2 = vpop.f32.mrf.mxu3  ;;  %v1849_v3 = vadd.f32 %v1848_v21, %v3958_v20  ;;  %v1937_v22 = vpop.f32.mrf.mxu1 }
 0x303   : > { %v2113_v23 = vadd.f32 %v2112_v2, %v2024_v1  ;;  %1887 = vmatmul.bf16.gmra.mxu0 %v4199_v25  ;;  %v1938_v26 = vadd.f32 %v1937_v22, %v1849_v3  ;;  %v4208_v25 = vld [vmem:[#allocation31_spill] sm:$0xff] }
 0x304   : > { %1976 = vmatmul.bf16.gmra.mxu1 %v4200_v27  ;;  %v4210_v27 = vld [vmem:[#allocation33_spill] sm:$0xff] }
 0x305   : > { %2197 = vst [vmem:[%s3562_s19 + $0x88] sm:$0xff] %v2113_v23  ;;  %2065 = vmatmul.bf16.gmra.mxu2 %v4201_v63 }
 0x306   : > { %2154 = vmatmul.bf16.gmra.mxu3 %v4202_v17 }
 0x308   : > { %v2026_v38 = vpop.f32.mrf.mxu2  ;;  %v1850_v6 = vpop.f32.mrf.mxu0 }
 0x309   : > { %v2027_v53 = vadd.f32 %v2026_v38, %v1938_v26  ;;  %v2115_v11 = vpop.f32.mrf.mxu3  ;;  %v1939_v12 = vpop.f32.mrf.mxu1  ;;  %v1851_v32 = vadd.f32 %v1850_v6, %v3958_v20  ;;  %v4209_v26 = vld [vmem:[#allocation32_spill] sm:$0xff] }
 0x30b   : > { %v2116_v18 = vadd.f32 %v2115_v11, %v2027_v53  ;;  %v1940_v42 = vadd.f32 %v1939_v12, %v1851_v32 }
 0x30d   : > { %2200 = vst [vmem:[%s3562_s19 + $0xa0] sm:$0xff] %v2116_v18 }
 0x310   : > { %v2028_v58 = vpop.f32.mrf.mxu2  ;;  %v1853_v56 = vpop.f32.mrf.mxu0 }
 0x311   : > { %v2029_v61 = vadd.f32 %v2028_v58, %v1940_v42  ;;  %v2117_v13 = vpop.f32.mrf.mxu3  ;;  %v1854_v57 = vadd.f32 %v1853_v56, %v3958_v20  ;;  %v1942_v33 = vpop.f32.mrf.mxu1 }
 0x313   : > { %v2118_v34 = vadd.f32 %v2117_v13, %v2029_v61  ;;  %1892 = vmatmul.bf16.gmra.mxu0 %v4203_v35  ;;  %v1943_v49 = vadd.f32 %v1942_v33, %v1854_v57 }
 0x314   : > { %1981 = vmatmul.bf16.gmra.mxu1 %v4204_v14 }
 0x315   : > { %2203 = vst [vmem:[%s3562_s19 + $0xb8] sm:$0xff] %v2118_v34  ;;  %2070 = vmatmul.bf16.gmra.mxu2 %v4205_v15 }
 0x316   : > { %2159 = vmatmul.bf16.gmra.mxu3 %v4206_v47 }
 0x318   : > { %v2031_v50 = vpop.f32.mrf.mxu2  ;;  %v1855_v4 = vpop.f32.mrf.mxu0 }
 0x319   : > { %v2032_v54 = vadd.f32 %v2031_v50, %v1943_v49  ;;  %v2120_v55 = vpop.f32.mrf.mxu3  ;;  %v1944_v31 = vpop.f32.mrf.mxu1  ;;  %v1856_v44 = vadd.f32 %v1855_v4, %v3958_v20 }
 0x31b   : > { %v2121_v28 = vadd.f32 %v2120_v55, %v2032_v54  ;;  %v1945_v8 = vadd.f32 %v1944_v31, %v1856_v44 }
 0x31d   : > { %2206 = vst [vmem:[%s3562_s19 + $0xd0] sm:$0xff] %v2121_v28 }
 0x320   : > { %v2033_v9 = vpop.f32.mrf.mxu2  ;;  %v1858_v51 = vpop.f32.mrf.mxu0 }
 0x321   : > { %v2034_v16 = vadd.f32 %v2033_v9, %v1945_v8  ;;  %v2122_v30 = vpop.f32.mrf.mxu3  ;;  %v1859_v52 = vadd.f32 %v1858_v51, %v3958_v20  ;;  %v1947_v45 = vpop.f32.mrf.mxu1 }
 0x323   : > { %v2123_v46 = vadd.f32 %v2122_v30, %v2034_v16  ;;  %1897 = vmatmul.bf16.gmra.mxu0 %v4185_v60  ;;  %v1948_v48 = vadd.f32 %v1947_v45, %v1859_v52 }
 0x324   : > { %1986 = vmatmul.bf16.gmra.mxu1 %v4186_v5 }
 0x325   : > { %2209 = vst [vmem:[%s3562_s19 + $0xe8] sm:$0xff] %v2123_v46  ;;  %2075 = vmatmul.bf16.gmra.mxu2 %v4187_v10 }
 0x326   : > { %2164 = vmatmul.bf16.gmra.mxu3 %v4207_v7 }
 0x328   : > { %v2036_v43 = vpop.f32.mrf.mxu2  ;;  %v1860_v0 = vpop.f32.mrf.mxu0 }
 0x329   : > { %v2037_v62 = vadd.f32 %v2036_v43, %v1948_v48  ;;  %v2125_v24 = vpop.f32.mrf.mxu3  ;;  %v1949_v19 = vpop.f32.mrf.mxu1  ;;  %v1861_v39 = vadd.f32 %v1860_v0, %v3958_v20 }
 0x32b   : > { %v2126_v36 = vadd.f32 %v2125_v24, %v2037_v62  ;;  %v1950_v1 = vadd.f32 %v1949_v19, %v1861_v39 }
 0x32d   : > { %2212 = vst [vmem:[%s3562_s19 + $0x100] sm:$0xff] %v2126_v36 }
 0x330   : > { %v2038_v60 = vpop.f32.mrf.mxu2  ;;  %v1863_v3 = vpop.f32.mrf.mxu0 }
 0x331   : > { %v2039_v2 = vadd.f32 %v2038_v60, %v1950_v1  ;;  %v2127_v21 = vpop.f32.mrf.mxu3  ;;  %v1864_v5 = vadd.f32 %v1863_v3, %v3958_v20  ;;  %v1952_v10 = vpop.f32.mrf.mxu1 }
 0x333   : > { %v2128_v22 = vadd.f32 %v2127_v21, %v2039_v2  ;;  %1902 = vmatmul.bf16.gmra.mxu0 %v4189_v41  ;;  %v1953_v23 = vadd.f32 %v1952_v10, %v1864_v5 }
 0x334   : > { %1991 = vmatmul.bf16.gmra.mxu1 %v4208_v25 }
 0x335   : > { %2215 = vst [vmem:[%s3562_s19 + $0x118] sm:$0xff] %v2128_v22  ;;  %2080 = vmatmul.bf16.gmra.mxu2 %v4209_v26 }
 0x336   : > { %2169 = vmatmul.bf16.gmra.mxu3 %v4210_v27 }
 0x338   : > { %v2041_v63 = vpop.f32.mrf.mxu2  ;;  %v1865_v53 = vpop.f32.mrf.mxu0 }
 0x339   : > { %v2042_v17 = vadd.f32 %v2041_v63, %v1953_v23  ;;  %v2130_v38 = vpop.f32.mrf.mxu3  ;;  %v1954_v11 = vpop.f32.mrf.mxu1  ;;  %v1866_v12 = vadd.f32 %v1865_v53, %v3958_v20 }
 0x33b   : > { %v2131_v6 = vadd.f32 %v2130_v38, %v2042_v17  ;;  %v1955_v18 = vadd.f32 %v1954_v11, %v1866_v12 }
 0x33d   : > { %2218 = vst [vmem:[%s3562_s19 + $0x130] sm:$0xff] %v2131_v6 }
 0x340   : > { %v2043_v41 = vpop.f32.mrf.mxu2  ;;  %v1868_v58 = vpop.f32.mrf.mxu0 }
 0x341   : > { %v2044_v32 = vadd.f32 %v2043_v41, %v1955_v18  ;;  %v2132_v42 = vpop.f32.mrf.mxu3  ;;  %v1869_v61 = vadd.f32 %v1868_v58, %v3958_v20  ;;  %v1957_v13 = vpop.f32.mrf.mxu1 }
 0x343   : > { %v2133_v56 = vadd.f32 %v2132_v42, %v2044_v32  ;;  %1907 = vmatmul.bf16.gmra.mxu0 %v3687_v37  ;;  %v1958_v57 = vadd.f32 %v1957_v13, %v1869_v61 }
 0x344   : > { %1996 = vmatmul.bf16.gmra.mxu1 %v3689_v40 }
 0x345   : > { %2221 = vst [vmem:[%s3562_s19 + $0x148] sm:$0xff] %v2133_v56  ;;  %2085 = vmatmul.bf16.gmra.mxu2 %v3691_v59 }
 0x346   : > { %2174 = vmatmul.bf16.gmra.mxu3 %v3694_v29 }
 0x348   : > { %v2046_v33 = vpop.f32.mrf.mxu2  ;;  %v1870_v49 = vpop.f32.mrf.mxu0 }
 0x349   : > { %v2047_v34 = vadd.f32 %v2046_v33, %v1958_v57  ;;  %v2135_v35 = vpop.f32.mrf.mxu3  ;;  %v1959_v14 = vpop.f32.mrf.mxu1  ;;  %v1871_v47 = vadd.f32 %v1870_v49, %v3958_v20 }
 0x34b   : > { %v2136_v15 = vadd.f32 %v2135_v35, %v2047_v34  ;;  %v1960_v50 = vadd.f32 %v1959_v14, %v1871_v47 }
 0x34d   : > { %2224 = vst [vmem:[%s3562_s19 + $0x160] sm:$0xff] %v2136_v15 }
 0x350   : > { %v2048_v37 = vpop.f32.mrf.mxu2  ;;  %v1873_v40 = vpop.f32.mrf.mxu0 }
 0x351   : > { %v2049_v54 = vadd.f32 %v2048_v37, %v1960_v50  ;;  %v2137_v55 = vpop.f32.mrf.mxu3  ;;  %v1874_v59 = vadd.f32 %v1873_v40, %v3958_v20  ;;  %v1962_v4 = vpop.f32.mrf.mxu1 }
 0x353   : > { %v2138_v29 = vadd.f32 %v2137_v55, %v2049_v54  ;;  %v1963_v31 = vadd.f32 %v1962_v4, %v1874_v59 }
 0x355   : > { %2227 = vst [vmem:[%s3562_s19 + $0x178] sm:$0xff] %v2138_v29 }
 0x358   : > { %v2051_v28 = vpop.f32.mrf.mxu2  ;;  %v1875_v9 = vpop.f32.mrf.mxu0 }
 0x359   : > { %v2052_v44 = vadd.f32 %v2051_v28, %v1963_v31  ;;  %v2140_v8 = vpop.f32.mrf.mxu3  ;;  %v1964_v16 = vpop.f32.mrf.mxu1  ;;  %v1876_v51 = vadd.f32 %v1875_v9, %v3958_v20 }
 0x35b   : > { %v2141_v30 = vadd.f32 %v2140_v8, %v2052_v44  ;;  %v1965_v52 = vadd.f32 %v1964_v16, %v1876_v51 }
 0x35d   : > { %2230 = vst [vmem:[%s3562_s19 + $0x190] sm:$0xff] %v2141_v30 }
 0x360   : > { %v2053_v45 = vpop.f32.mrf.mxu2  ;;  %v1878_v7 = vpop.f32.mrf.mxu0 }
 0x361   : > { %v2054_v46 = vadd.f32 %v2053_v45, %v1965_v52  ;;  %v2142_v48 = vpop.f32.mrf.mxu3  ;;  %v1879_v43 = vadd.f32 %v1878_v7, %v3958_v20  ;;  %v1967_v62 = vpop.f32.mrf.mxu1 }
 0x363   : > { %v2143_v24 = vadd.f32 %v2142_v48, %v2054_v46  ;;  %v1968_v0 = vadd.f32 %v1967_v62, %v1879_v43 }
 0x365   : > { %2233 = vst [vmem:[%s3562_s19 + $0x1a8] sm:$0xff] %v2143_v24 }
 0x368   : > { %v2056_v19 = vpop.f32.mrf.mxu2  ;;  %v1880_v1 = vpop.f32.mrf.mxu0 }
 0x369   : > { %v2057_v36 = vadd.f32 %v2056_v19, %v1968_v0  ;;  %v2145_v39 = vpop.f32.mrf.mxu3  ;;  %v1969_v60 = vpop.f32.mrf.mxu1  ;;  %v1881_v21 = vadd.f32 %v1880_v1, %v3958_v20 }
 0x36b   : > { %v2146_v2 = vadd.f32 %v2145_v39, %v2057_v36  ;;  %v1970_v3 = vadd.f32 %v1969_v60, %v1881_v21 }
 0x36d   : > { %2236 = vst [vmem:[%s3562_s19 + $0x1c0] sm:$0xff] %v2146_v2 }
 0x370   : > { %v2058_v5 = vpop.f32.mrf.mxu2  ;;  %v1883_v23 = vpop.f32.mrf.mxu0 }
 0x371   : > { %v2059_v10 = vadd.f32 %v2058_v5, %v1970_v3  ;;  %v2147_v22 = vpop.f32.mrf.mxu3  ;;  %v1884_v25 = vadd.f32 %v1883_v23, %v3958_v20  ;;  %v1972_v26 = vpop.f32.mrf.mxu1 }
 0x373   : > { %v2148_v27 = vadd.f32 %v2147_v22, %v2059_v10  ;;  %v1973_v63 = vadd.f32 %v1972_v26, %v1884_v25 }
 0x375   : > { %2239 = vst [vmem:[%s3562_s19 + $0x1d8] sm:$0xff] %v2148_v27 }
 0x378   : > { %v2061_v17 = vpop.f32.mrf.mxu2  ;;  %v1885_v11 = vpop.f32.mrf.mxu0 }
 0x379   : > { %v2062_v38 = vadd.f32 %v2061_v17, %v1973_v63  ;;  %v2150_v53 = vpop.f32.mrf.mxu3  ;;  %v1974_v6 = vpop.f32.mrf.mxu1  ;;  %v1886_v18 = vadd.f32 %v1885_v11, %v3958_v20 }
 0x37b   : > { %v2151_v12 = vadd.f32 %v2150_v53, %v2062_v38  ;;  %v1975_v41 = vadd.f32 %v1974_v6, %v1886_v18 }
 0x37d   : > { %2242 = vst [vmem:[%s3562_s19 + $0x1f0] sm:$0xff] %v2151_v12 }
 0x380   : > { %v2063_v32 = vpop.f32.mrf.mxu2  ;;  %v1888_v61 = vpop.f32.mrf.mxu0 }
 0x381   : > { %v2064_v42 = vadd.f32 %v2063_v32, %v1975_v41  ;;  %v2152_v58 = vpop.f32.mrf.mxu3  ;;  %v1889_v13 = vadd.f32 %v1888_v61, %v3958_v20  ;;  %v1977_v56 = vpop.f32.mrf.mxu1 }
 0x383   : > { %v2153_v57 = vadd.f32 %v2152_v58, %v2064_v42  ;;  %v1978_v33 = vadd.f32 %v1977_v56, %v1889_v13 }
 0x385   : > { %2245 = vst [vmem:[%s3562_s19 + $0x208] sm:$0xff] %v2153_v57 }
 0x388   : > { %v2066_v34 = vpop.f32.mrf.mxu2  ;;  %v1890_v14 = vpop.f32.mrf.mxu0 }
 0x389   : > { %v2067_v35 = vadd.f32 %v2066_v34, %v1978_v33  ;;  %v2155_v49 = vpop.f32.mrf.mxu3  ;;  %v1979_v15 = vpop.f32.mrf.mxu1  ;;  %v1891_v50 = vadd.f32 %v1890_v14, %v3958_v20 }
 0x38b   : > { %v2156_v47 = vadd.f32 %v2155_v49, %v2067_v35  ;;  %v1980_v37 = vadd.f32 %v1979_v15, %v1891_v50 }
 0x38d   : > { %2248 = vst [vmem:[%s3562_s19 + $0x220] sm:$0xff] %v2156_v47 }
 0x390   : > { %v2068_v54 = vpop.f32.mrf.mxu2  ;;  %v1893_v59 = vpop.f32.mrf.mxu0 }
 0x391   : > { %v2069_v55 = vadd.f32 %v2068_v54, %v1980_v37  ;;  %v2157_v40 = vpop.f32.mrf.mxu3  ;;  %v1894_v4 = vadd.f32 %v1893_v59, %v3958_v20  ;;  %v1982_v29 = vpop.f32.mrf.mxu1 }
 0x393   : > { %v2158_v31 = vadd.f32 %v2157_v40, %v2069_v55  ;;  %v1983_v28 = vadd.f32 %v1982_v29, %v1894_v4 }
 0x395   : > { %2251 = vst [vmem:[%s3562_s19 + $0x238] sm:$0xff] %v2158_v31 }
 0x398   : > { %v2071_v44 = vpop.f32.mrf.mxu2  ;;  %v1895_v16 = vpop.f32.mrf.mxu0 }
 0x399   : > { %v2072_v8 = vadd.f32 %v2071_v44, %v1983_v28  ;;  %v2160_v9 = vpop.f32.mrf.mxu3  ;;  %v1984_v30 = vpop.f32.mrf.mxu1  ;;  %v1896_v52 = vadd.f32 %v1895_v16, %v3958_v20 }
 0x39b   : > { %v2161_v51 = vadd.f32 %v2160_v9, %v2072_v8  ;;  %v1985_v45 = vadd.f32 %v1984_v30, %v1896_v52 }
 0x39d   : > { %2254 = vst [vmem:[%s3562_s19 + $0x250] sm:$0xff] %v2161_v51 }
 0x3a0   : > { %v2073_v46 = vpop.f32.mrf.mxu2  ;;  %v1898_v43 = vpop.f32.mrf.mxu0 }
 0x3a1   : > { %v2074_v48 = vadd.f32 %v2073_v46, %v1985_v45  ;;  %v2162_v7 = vpop.f32.mrf.mxu3  ;;  %v1899_v62 = vadd.f32 %v1898_v43, %v3958_v20  ;;  %v1987_v24 = vpop.f32.mrf.mxu1 }
 0x3a3   : > { %v2163_v0 = vadd.f32 %v2162_v7, %v2074_v48  ;;  %v1988_v19 = vadd.f32 %v1987_v24, %v1899_v62 }
 0x3a5   : > { %2257 = vst [vmem:[%s3562_s19 + $0x268] sm:$0xff] %v2163_v0 }
 0x3a8   : > { %v2076_v36 = vpop.f32.mrf.mxu2  ;;  %v1900_v60 = vpop.f32.mrf.mxu0 }
 0x3a9   : > { %v2077_v39 = vadd.f32 %v2076_v36, %v1988_v19  ;;  %v2165_v1 = vpop.f32.mrf.mxu3  ;;  %v1989_v2 = vpop.f32.mrf.mxu1  ;;  %v1901_v3 = vadd.f32 %v1900_v60, %v3958_v20 }
 0x3ab   : > { %v2166_v21 = vadd.f32 %v2165_v1, %v2077_v39  ;;  %v1990_v5 = vadd.f32 %v1989_v2, %v1901_v3 }
 0x3ad   : > { %2260 = vst [vmem:[%s3562_s19 + $0x280] sm:$0xff] %v2166_v21 }
 0x3b0   : > { %v2078_v10 = vpop.f32.mrf.mxu2  ;;  %v1903_v25 = vpop.f32.mrf.mxu0 }
 0x3b1   : > { %v2079_v22 = vadd.f32 %v2078_v10, %v1990_v5  ;;  %v2167_v23 = vpop.f32.mrf.mxu3  ;;  %v1904_v26 = vadd.f32 %v1903_v25, %v3958_v20  ;;  %v1992_v27 = vpop.f32.mrf.mxu1 }
 0x3b3   : > { %v2168_v63 = vadd.f32 %v2167_v23, %v2079_v22  ;;  %v1993_v17 = vadd.f32 %v1992_v27, %v1904_v26 }
 0x3b5   : > { %2263 = vst [vmem:[%s3562_s19 + $0x298] sm:$0xff] %v2168_v63 }
 0x3b8   : > { %v2081_v38 = vpop.f32.mrf.mxu2  ;;  %v1905_v6 = vpop.f32.mrf.mxu0 }
 0x3b9   : > { %v2082_v53 = vadd.f32 %v2081_v38, %v1993_v17  ;;  %v2170_v11 = vpop.f32.mrf.mxu3  ;;  %v1994_v12 = vpop.f32.mrf.mxu1  ;;  %v1906_v41 = vadd.f32 %v1905_v6, %v3958_v20 }
 0x3bb   : > { %v2171_v18 = vadd.f32 %v2170_v11, %v2082_v53  ;;  %v1995_v32 = vadd.f32 %v1994_v12, %v1906_v41 }
 0x3bd   : > { %2266 = vst [vmem:[%s3562_s19 + $0x2b0] sm:$0xff] %v2171_v18 }
 0x3c0   : > { %v2083_v42 = vpop.f32.mrf.mxu2  ;;  %v1908_v13 = vpop.f32.mrf.mxu0 }
 0x3c1   : > { %v2084_v58 = vadd.f32 %v2083_v42, %v1995_v32  ;;  %v2172_v61 = vpop.f32.mrf.mxu3  ;;  %v1909_v56 = vadd.f32 %v1908_v13, %v3958_v20  ;;  %v1997_v33 = vpop.f32.mrf.mxu1 }
 0x3c3   : > { %v2173_v57 = vadd.f32 %v2172_v61, %v2084_v58  ;;  %v1998_v34 = vadd.f32 %v1997_v33, %v1909_v56 }
 0x3c5   : > { %2269 = vst [vmem:[%s3562_s19 + $0x2c8] sm:$0xff] %v2173_v57 }
 0x3c8   : > { %v2086_v35 = vpop.f32.mrf.mxu2  ;;  %v1910_v15 = vpop.f32.mrf.mxu0 }
 0x3c9   : > { %v2087_v49 = vadd.f32 %v2086_v35, %v1998_v34  ;;  %v2175_v14 = vpop.f32.mrf.mxu3  ;;  %v1911_v50 = vadd.f32 %v1910_v15, %v3958_v20  ;;  %v1999_v37 = vpop.f32.mrf.mxu1 }
 0x3cb   : > { %v2176_v47 = vadd.f32 %v2175_v14, %v2087_v49  ;;  %v2000_v54 = vadd.f32 %v1999_v37, %v1911_v50 }
 0x3cd   : > { %2272 = vst [vmem:[%s3562_s19 + $0x2e0] sm:$0xff] %v2176_v47 }
 0x3d0   : > { %v2088_v55 = vpop.f32.mrf.mxu2 }
 0x3d1   : > { %v2089_v40 = vadd.f32 %v2088_v55, %v2000_v54  ;;  %v2177_v59 = vpop.f32.mrf.mxu3 }
 0x3d3   : > { %v2178_v4 = vadd.f32 %v2177_v59, %v2089_v40 }
 0x3d5   : > { %2275 = vst [vmem:[%s3562_s19 + $0x2f8] sm:$0xff] %v2178_v4 }
 0x3d6   : > { %3114 = shalt.err (!%p3111_p13)
}
 0x3d7   : > { %s3181_s26 = smov 384   ;;  %s3182_s30 = smov 768  }
 0x3d8   : > { %s3183_s1 = smov 24  }
 0x3d9   : > { %2918 = dma.vmem_to_hbm [thread:$0]  (%p3286_p0), %s2293_s5, 12288, %s2295_s7, %s2277_s15, %s3181_s26, %s3182_s30, %s3183_s1  }
 0x3da PF: > { %s2309_s6 = sand.u32 1, %s3153_s12   ;;  %p2932_p4 = pnand %p2417_p3, %p3290_p2 }
 0x3db   : > { %s2310_s10 = scalar_lea.sflag [#allocation4], %s2309_s6 }
 0x3dc   : > { %p2933_p5 = pneg %p2932_p4 }
 0x3de   : > { %3148 = dma.done.wait (%p2933_p5), %s2310_s10, 12288  }
 0x3df   : > { %3150 = vsyncadd (%p2933_p5), %s2310_s10, 4294955008  ;;  %s20_s17 = sadd.s32 1, %s3173_s17   ;;  %s4211_s12 = smov %s3157_s13 }
 0x3e0   : > { %p17_p1 = scmp.ge.s32.totalorder %s20_s17, 4   ;;  %s4212_s13 = smov %s3161_s14 }
 0x3e1   : > { %s4213_s14 = smov %s3252_s24  ;;  %s4214_s15 = smov %s3169_s16 }
 0x3e2   : > { %s4215_s16 = smov %s4217_s18  ;;  %19 = sbr.rel (!%p17_p1) target bundleno = 10 (0xa), region = 94 }
 0x3e7   :  { %2316 = vsyncpa [#allocation3], 1 }
 0x3e8   :  { %2318 = vsyncpa [#allocation3 + $0x1], 1 }
 0x3e9   :  { %2319 = vsyncpa [#allocation6], 1 }
 0x3ea   :  { %2321 = vsyncpa [#allocation6 + $0x1], 1 }
 0x3eb   :  { %2322 = vsyncpa [#allocation4], 1 }
 0x3ec   :  { %2324 = vsyncpa [#allocation4 + $0x1], 1 }

</bundles_post_ra>
